<compile_context>
chip_gen: v7x
topology: tpu7x:2x2x1
jax: 0.10.0
libtpu: 0.0.40
codegen_flags: <defaults>
</compile_context>

<pallas_src>
import functools

import jax
import jax.numpy as jnp
from jax.experimental import pallas as pl
from jax.experimental.pallas import tpu as pltpu


# ----------------------------------------------------------------------------
# Pallas kernel: full stack of residual GAT layers for a block of batch elems.
# ----------------------------------------------------------------------------
def _gat_stack_kernel(x_ref, adjb_ref, w_ref, acat_ref, bias_ref, gamma_ref,
                      beta_ref, hmask_ref, o_ref, *, num_layers, heads,
                      batch_block, nodes, hidden):
    Bb, N, H = batch_block, nodes, hidden
    h = x_ref[...].reshape(Bb * N, H).astype(jnp.float32)          # [Bb*N, H]

    # Additive attention-mask bias: 0 on edges, ~-3e4 off-edge (hoisted once).
    mask = [adjb_ref[b].astype(jnp.float32) for b in range(Bb)]    # Bb x [N, N]

    for l in range(num_layers):                                    # static layer unroll
        w = w_ref[l]                                               # [H, H] bf16
        # Whole-batch-block projection: one [Bb*N, H] @ [H, H] per layer.
        g = jnp.dot(h.astype(jnp.bfloat16), w,
                    preferred_element_type=jnp.float32)            # [Bb*N, H] f32
        g_bf = g.astype(jnp.bfloat16)
        # Per-head dst|src attention scores via ONE block-diagonal matmul.
        sc = jnp.dot(g_bf, acat_ref[l],
                     preferred_element_type=jnp.float32)           # [Bb*N, 2*heads]
        e_dst = sc[:, :heads]                                      # [Bb*N, heads]
        e_src_t = sc[:, heads:].T                                  # [heads, Bb*N] (one small XLU transpose / layer)

        # TODO(synk): batching the masked softmax across heads (stacking the
        # per-head [N,N] maps along the sublane axis) needs a lane->sublane
        # relayout of the head axis; kept as a short static head loop.
        pieces = []
        for b in range(Bb):                    # per-batch-element attention (adjacency is per batch)
            g_b = g_bf[b * N:(b + 1) * N, :]                       # [N, H] bf16
            acc = jnp.zeros((N, H), jnp.float32)
            for hh in range(heads):                                # static head unroll
                e = (e_dst[b * N:(b + 1) * N, hh:hh + 1]
                     + e_src_t[hh:hh + 1, b * N:(b + 1) * N])      # e[i, j] = dst_i + src_j
                e = jnp.where(e > 0.0, e, 0.2 * e)                 # LeakyReLU(negative_slope=0.2)
                e = e + mask[b]                                    # additive off-edge bias (no select)
                e = e - jnp.max(e, axis=-1, keepdims=True)         # stable masked softmax over sources j
                p = jnp.exp(e)                                     # off-edge entries underflow to exactly 0
                alpha = p * pl.reciprocal(
                    jnp.sum(p, axis=-1, keepdims=True), approx=True)   # divide on the EUP slot
                # TODO(synk): at production N/H replace the full-width product +
                # per-head column mask with alpha @ g[:, head_slice] (or a
                # block-diagonal stacked-alpha matmul) to avoid (heads-1)/heads
                # wasted MXU FLOPs; at these sizes it is one MXU pass anyway.
                acc = acc + (jnp.dot(alpha.astype(jnp.bfloat16), g_b,
                                     preferred_element_type=jnp.float32)
                             * hmask_ref[hh:hh + 1, :])
            pieces.append(acc)
        out = pieces[0] if Bb == 1 else jnp.concatenate(pieces, axis=0)  # [Bb*N, H]

        out = out + bias_ref[l:l + 1, :]            # GATConv bias (size H after head concat)
        out = jnp.maximum(out, 0.0)                 # ReLU (dropout = eval-mode identity)
        y = out + h                                 # residual connection
        mu = jnp.mean(y, axis=-1, keepdims=True)    # LayerNorm over H (eps = 1e-5)
        var = jnp.mean((y - mu) ** 2, axis=-1, keepdims=True)
        y = (y - mu) * jax.lax.rsqrt(var + 1e-5)
        h = y * gamma_ref[l:l + 1, :] + beta_ref[l:l + 1, :]

    o_ref[...] = h.reshape(Bb, N, H).astype(o_ref.dtype)


# ----------------------------------------------------------------------------
# Wrapper: batch-block selection, VMEM budgeting, block-diag att operand.
# ----------------------------------------------------------------------------
def _pick_num_batch_blocks(B, max_unroll=8):
    # >= 2 "parallel" grid blocks whenever possible so both v7x TensorCores get
    # work; ~0.35 us extra per grid step is negligible on single-TC v5e/v6e.
    want = 2 if B >= 2 else 1
    for d in range(1, B + 1):
        if B % d == 0 and d >= want and B // d <= max_unroll:
            return d
    return B


def _vmem_bytes_estimate(Bb, N, H, num_layers, heads, io_bufs):
    io = io_bufs * (Bb * N * H * 4 + Bb * N * N * 2 + Bb * N * H * 4)       # x + adj bias + out blocks
    par = 2 * (num_layers * (2 * H * H + 2 * H * 2 * heads)                 # bf16 W + A_cat (double-buffered)
               + 4 * (3 * num_layers * H + heads * H))                      # f32 bias/gamma/beta/hmask
    work = 4 * (3 * Bb * N * H + Bb * N * 2 * heads + Bb * N * N
                + 6 * N * N + 2 * N * H)                                    # rough in-flight working set
    return io + par + work


def gat_stack_pallas(x, adj, W, att_src, att_dst, bias, gamma, beta, *,
                     heads, num_batch_blocks=None):
    """x: [B, N, H] f32, adj: [B, N, N] 0/1 mask; returns [B, N, H] f32."""
    B, N, H = x.shape
    num_layers = W.shape[0]
    assert H % heads == 0
    head_dim = H // heads

    if num_batch_blocks is None:
        num_batch_blocks = _pick_num_batch_blocks(B)

    # Generation-aware VMEM budgeting: 40 MiB keeps the block well inside
    # v7x's 64 MiB physical VMEM (half of v5e/v6e) and below v5e's physical
    # limit once vmem_limit_bytes is raised explicitly.  Shrink Bb (raise
    # num_batch_blocks) before giving up.
    budget = 40 * 2 ** 20
    while True:
        Bb = B // num_batch_blocks
        io_bufs = 1 if num_batch_blocks == 1 else 2
        est = _vmem_bytes_estimate(Bb, N, H, num_layers, heads, io_bufs)
        if est <= budget or Bb == 1:
            break
        num_batch_blocks = next(
            d for d in range(num_batch_blocks + 1, B + 1) if B % d == 0)
    if est > budget:
        # TODO(synk): tile the source-node axis with an online masked softmax
        # (streaming the adjacency) once a single batch element no longer fits.
        raise ValueError(
            f"GAT block needs ~{est / 2**20:.1f} MiB of VMEM even at Bb=1; "
            "tile the source-node axis.")
    vmem_limit = int(min(max(2 * est, 32 * 2 ** 20), 48 * 2 ** 20))

    # Block-diagonal per-head attention operand [num_layers, H, 2*heads]:
    #   A[l, hh*head_dim + d, m]         = att_dst[l, hh, d] * (hh == m)
    #   A[l, hh*head_dim + d, heads + m] = att_src[l, hh, d] * (hh == m)
    eye = jnp.eye(heads, dtype=jnp.float32)
    A_dst = (att_dst[..., None] * eye[None, :, None, :]).reshape(num_layers, H, heads)
    A_src = (att_src[..., None] * eye[None, :, None, :]).reshape(num_layers, H, heads)
    A_cat = jnp.concatenate([A_dst, A_src], axis=-1).astype(jnp.bfloat16)
    head_mask = jnp.repeat(eye, head_dim, axis=1)                 # [heads, H] f32

    # Additive attention-mask bias (0 on edges, ~-3e4 off-edge), shipped bf16:
    # halves the only O(N^2) DMA and removes the per-head select in the kernel.
    adj_bias = ((adj - 1.0) * 30000.0).astype(jnp.bfloat16)
    W_bf = W.astype(jnp.bfloat16)

    kernel = functools.partial(
        _gat_stack_kernel, num_layers=num_layers, heads=heads,
        batch_block=Bb, nodes=N, hidden=H)

    # Single grid step => nothing to pipeline: don't double-buffer x/adj/out.
    io_kw = dict(pipeline_mode=pl.Buffered(1)) if num_batch_blocks == 1 else {}

    # Parameter operands have constant index_maps: Pallas only issues a new
    # copy when a block index changes between consecutive grid steps, so they
    # are DMA'd exactly once regardless of the batch grid length.
    return pl.pallas_call(
        kernel,
        out_shape=jax.ShapeDtypeStruct((B, N, H), jnp.float32),
        grid=(num_batch_blocks,),
        in_specs=[
            pl.BlockSpec((Bb, N, H), lambda i: (i, 0, 0), **io_kw),           # x
            pl.BlockSpec((Bb, N, N), lambda i: (i, 0, 0), **io_kw),           # additive adjacency bias (bf16)
            pl.BlockSpec((num_layers, H, H), lambda i: (0, 0, 0)),            # GAT linear weights (bf16)
            pl.BlockSpec((num_layers, H, 2 * heads), lambda i: (0, 0, 0)),    # block-diag att dst|src (bf16)
            pl.BlockSpec((num_layers, H), lambda i: (0, 0)),                  # GAT bias
            pl.BlockSpec((num_layers, H), lambda i: (0, 0)),                  # LayerNorm gamma
            pl.BlockSpec((num_layers, H), lambda i: (0, 0)),                  # LayerNorm beta
            pl.BlockSpec((heads, H), lambda i: (0, 0)),                       # per-head column mask
        ],
        # TODO(synk): a lane-dense [B, N*H] output (full-width stores) needs an
        # in-kernel (N, H) -> (N*H) sublane->lane relayout; left as [B, N, H]
        # since the whole output is only a couple of vregs per batch element.
        out_specs=pl.BlockSpec((Bb, N, H), lambda i: (i, 0, 0), **io_kw),
        compiler_params=pltpu.CompilerParams(
            dimension_semantics=("parallel",),
            vmem_limit_bytes=vmem_limit),
    )(x, adj_bias, W_bf, A_cat, bias, gamma, beta, head_mask)


# ----------------------------------------------------------------------------
# JAX glue: graph (adjacency mask) construction — mirrors the PyTorch edge list.
# ----------------------------------------------------------------------------
def _cosine_sim(a, b, eps=1e-8):
    # a: [B, M, H], b: [B, K, H] -> [B, M, K]   (matches F.cosine_similarity, eps=1e-8)
    num = jnp.einsum("bmh,bkh->bmk", a, b)
    na = jnp.linalg.norm(a, axis=-1)
    nb = jnp.linalg.norm(b, axis=-1)
    den = jnp.maximum(na[:, :, None] * nb[:, None, :], eps)
    return num / den


def build_adjacency(text, label, image, top_k,
                    connect_image_to_label=True,
                    connect_image_to_image=True,
                    connect_label_to_label=True):
    # TODO(synk): top-k / edge-list construction is data-dependent graph glue;
    # it is done in plain JAX and handed to the kernel as a dense 0/1 mask.
    B, T, _ = text.shape
    L = label.shape[1]
    I = image.shape[1] if image is not None else 0
    N = T + L + I
    adj = jnp.zeros((B, N, N), jnp.float32)

    # sequential text chain (bidirectional)
    i = jnp.arange(T - 1)
    chain = jnp.zeros((N, N), jnp.float32).at[i, i + 1].set(1.0).at[i + 1, i].set(1.0)
    adj = jnp.maximum(adj, chain[None])

    # text <-> label top-k cosine-similarity edges (bidirectional)
    _, idx_l = jax.lax.top_k(_cosine_sim(text, label), top_k)              # [B, T, k]
    m_l = jnp.max(jax.nn.one_hot(idx_l, L, dtype=jnp.float32), axis=2)     # [B, T, L]
    adj = adj.at[:, :T, T:T + L].max(m_l)
    adj = adj.at[:, T:T + L, :T].max(jnp.swapaxes(m_l, 1, 2))

    if image is not None:
        # text <-> image top-k cosine-similarity edges (bidirectional)
        _, idx_i = jax.lax.top_k(_cosine_sim(text, image), top_k)
        m_i = jnp.max(jax.nn.one_hot(idx_i, I, dtype=jnp.float32), axis=2)
        adj = adj.at[:, :T, T + L:].max(m_i)
        adj = adj.at[:, T + L:, :T].max(jnp.swapaxes(m_i, 1, 2))
        if connect_image_to_label:
            adj = adj.at[:, T + L:, T:T + L].set(1.0)
            adj = adj.at[:, T:T + L, T + L:].set(1.0)
        if connect_image_to_image:
            adj = adj.at[:, T + L:, T + L:].set(1.0)
    if connect_label_to_label:
        adj = adj.at[:, T:T + L, T:T + L].set(1.0)

    # GATConv(add_self_loops=True): one self-loop per node (guarantees every
    # softmax row has at least one unmasked entry).
    adj = jnp.maximum(adj, jnp.eye(N, dtype=jnp.float32)[None])
    return adj


def graph_fusion_forward(params, text, label, image=None, *, heads, top_k):
    """text: [B,T,H], label: [B,L,H], image: [B,I,H] or None -> [B,T,H]."""
    B, T, H = text.shape
    parts = [text, label] + ([image] if image is not None else [])
    x = jnp.concatenate(parts, axis=1)                       # [B, N, H]
    adj = build_adjacency(text, label, image, top_k)
    h = gat_stack_pallas(x, adj, params["W"], params["att_src"], params["att_dst"],
                         params["bias"], params["gamma"], params["beta"], heads=heads)
    return h[:, :T, :]


# ----------------------------------------------------------------------------
# Deterministic parameter init (shapes from GraphFusion.__init__ / GATConv).
# ----------------------------------------------------------------------------
def init_params(key, hidden_size, num_layers, heads):
    hd = hidden_size // heads
    k_w, k_s, k_d = jax.random.split(key, 3)
    W = jax.random.normal(k_w, (num_layers, hidden_size, hidden_size),
                          jnp.float32) / jnp.sqrt(hidden_size)
    att_src = jax.random.normal(k_s, (num_layers, heads, hd), jnp.float32) * 0.1
    att_dst = jax.random.normal(k_d, (num_layers, heads, hd), jnp.float32) * 0.1
    bias = jnp.zeros((num_layers, hidden_size), jnp.float32)
    gamma = jnp.ones((num_layers, hidden_size), jnp.float32)
    beta = jnp.zeros((num_layers, hidden_size), jnp.float32)
    return dict(W=W, att_src=att_src, att_dst=att_dst,
                bias=bias, gamma=gamma, beta=beta)


if __name__ == "__main__":
    key = jax.random.PRNGKey(0)
    B, T, L, I, H = 2, 8, 4, 4, 32
    heads, num_layers, top_k = 4, 3, 3

    k_t, k_l, k_i, k_p = jax.random.split(key, 4)
    text = jax.random.normal(k_t, (B, T, H), jnp.float32)
    label = jax.random.normal(k_l, (B, L, H), jnp.float32)
    image = jax.random.normal(k_i, (B, I, H), jnp.float32)
    params = init_params(k_p, H, num_layers, heads)

    out = graph_fusion_forward(params, text, label, image, heads=heads, top_k=top_k)
    out = jax.block_until_ready(out)
    assert out.shape == (B, T, H) and out.dtype == jnp.float32
    assert bool(jnp.all(jnp.isfinite(out)))
    print("KERNEL_OK")
</pallas_src>

<mosaic_0001>
module attributes {stable_mosaic.version = 11 : i64} {
  func.func @_gat_stack_kernel(%arg0: i32, %arg1: memref<1x16x32xf32, #tpu.memory_space<vmem>>, %arg2: memref<1x16x16xbf16, #tpu.memory_space<vmem>>, %arg3: memref<3x32x32xbf16, #tpu.memory_space<vmem>>, %arg4: memref<3x32x8xbf16, #tpu.memory_space<vmem>>, %arg5: memref<3x32xf32, #tpu.memory_space<vmem>>, %arg6: memref<3x32xf32, #tpu.memory_space<vmem>>, %arg7: memref<3x32xf32, #tpu.memory_space<vmem>>, %arg8: memref<4x32xf32, #tpu.memory_space<vmem>>, %arg9: memref<1x16x32xf32, #tpu.memory_space<vmem>>) attributes {dimension_semantics = [#tpu.dimension_semantics<parallel>], iteration_bounds = array<i64: 2>, scalar_prefetch = 0 : i64, scratch_operands = 0 : i64, tpu.core_type = #tpu.core_type<tc>, window_params = [{transform_indices = @transform_0, window_bounds = array<i64: 1, 16, 32>}, {transform_indices = @transform_1, window_bounds = array<i64: 1, 16, 16>}, {pipeline_mode = #tpu.pipeline_mode<synchronous>, transform_indices = @transform_2, window_bounds = array<i64: 3, 32, 32>}, {pipeline_mode = #tpu.pipeline_mode<synchronous>, transform_indices = @transform_3, window_bounds = array<i64: 3, 32, 8>}, {pipeline_mode = #tpu.pipeline_mode<synchronous>, transform_indices = @transform_4, window_bounds = array<i64: 3, 32>}, {pipeline_mode = #tpu.pipeline_mode<synchronous>, transform_indices = @transform_5, window_bounds = array<i64: 3, 32>}, {pipeline_mode = #tpu.pipeline_mode<synchronous>, transform_indices = @transform_6, window_bounds = array<i64: 3, 32>}, {pipeline_mode = #tpu.pipeline_mode<synchronous>, transform_indices = @transform_7, window_bounds = array<i64: 4, 32>}, {transform_indices = @transform_8, window_bounds = array<i64: 1, 16, 32>}]} {
    %c0 = arith.constant 0 : index
    %c0_0 = arith.constant 0 : index
    %c0_1 = arith.constant 0 : index
    %0 = vector.load %arg1[%c0, %c0_0, %c0_1] : memref<1x16x32xf32, #tpu.memory_space<vmem>>, vector<1x16x32xf32>
    %1 = vector.shape_cast %0 : vector<1x16x32xf32> to vector<16x32xf32>
    %c0_2 = arith.constant 0 : index
    %c0_3 = arith.constant 0 : index
    %c0_4 = arith.constant 0 : index
    %2 = vector.load %arg2[%c0_2, %c0_3, %c0_4] : memref<1x16x16xbf16, #tpu.memory_space<vmem>>, vector<1x16x16xbf16>
    %3 = vector.shape_cast %2 : vector<1x16x16xbf16> to vector<16x16xbf16>
    %4 = arith.extf %3 : vector<16x16xbf16> to vector<16x16xf32>
    %c0_5 = arith.constant 0 : index
    %c0_6 = arith.constant 0 : index
    %c0_7 = arith.constant 0 : index
    %5 = vector.load %arg3[%c0_5, %c0_6, %c0_7] : memref<3x32x32xbf16, #tpu.memory_space<vmem>>, vector<1x32x32xbf16>
    %6 = vector.shape_cast %5 : vector<1x32x32xbf16> to vector<32x32xbf16>
    %7 = arith.truncf %1 : vector<16x32xf32> to vector<16x32xbf16>
    %cst = arith.constant dense<0.000000e+00> : vector<16x32xf32>
    %8 = tpu.matmul %7, %6, %cst {dimension_numbers = #tpu.dot_dimension_numbers<[1], [0], [0], [1], [0, 0, 1, 1], [], []>} : vector<16x32xbf16>, vector<32x32xbf16>, vector<16x32xf32> -> vector<16x32xf32>
    %9 = arith.truncf %8 : vector<16x32xf32> to vector<16x32xbf16>
    %c0_8 = arith.constant 0 : index
    %c0_9 = arith.constant 0 : index
    %c0_10 = arith.constant 0 : index
    %10 = vector.load %arg4[%c0_8, %c0_9, %c0_10] : memref<3x32x8xbf16, #tpu.memory_space<vmem>>, vector<1x32x8xbf16>
    %11 = vector.shape_cast %10 : vector<1x32x8xbf16> to vector<32x8xbf16>
    %cst_11 = arith.constant dense<0.000000e+00> : vector<16x8xf32>
    %12 = tpu.matmul %9, %11, %cst_11 {dimension_numbers = #tpu.dot_dimension_numbers<[1], [0], [0], [1], [0, 0, 1, 1], [], []>} : vector<16x32xbf16>, vector<32x8xbf16>, vector<16x8xf32> -> vector<16x8xf32>
    %13 = vector.extract_strided_slice %12 {offsets = [0, 0], sizes = [16, 4], strides = [1, 1]} : vector<16x8xf32> to vector<16x4xf32>
    %14 = vector.extract_strided_slice %12 {offsets = [0, 4], sizes = [16, 4], strides = [1, 1]} : vector<16x8xf32> to vector<16x4xf32>
    %15 = tpu.transpose %14, [1, 0] : vector<16x4xf32> -> vector<4x16xf32>
    %cst_12 = arith.constant 0.000000e+00 : f32
    %16 = vector.broadcast %cst_12 : f32 to vector<16x32xf32>
    %17 = vector.extract_strided_slice %13 {offsets = [0, 0], sizes = [16, 1], strides = [1, 1]} : vector<16x4xf32> to vector<16x1xf32>
    %18 = vector.extract_strided_slice %15 {offsets = [0, 0], sizes = [1, 16], strides = [1, 1]} : vector<4x16xf32> to vector<1x16xf32>
    %19 = vector.broadcast %17 : vector<16x1xf32> to vector<16x16xf32>
    %20 = vector.broadcast %18 : vector<1x16xf32> to vector<16x16xf32>
    %21 = arith.addf %19, %20 : vector<16x16xf32>
    %cst_13 = arith.constant 0.000000e+00 : f32
    %22 = vector.broadcast %cst_13 : f32 to vector<16x16xf32>
    %23 = arith.cmpf ogt, %21, %22 : vector<16x16xf32>
    %cst_14 = arith.constant 2.000000e-01 : f32
    %24 = vector.broadcast %cst_14 : f32 to vector<16x16xf32>
    %25 = arith.mulf %24, %21 : vector<16x16xf32>
    %26 = arith.select %23, %21, %25 : vector<16x16xi1>, vector<16x16xf32>
    %27 = arith.addf %26, %4 : vector<16x16xf32>
    %cst_15 = arith.constant dense<0xFF800000> : vector<16xf32>
    %28 = vector.multi_reduction <maximumf>, %27, %cst_15 [1] : vector<16x16xf32> to vector<16xf32>
    %29 = vector.shape_cast %28 : vector<16xf32> to vector<16x1xf32>
    %30 = vector.broadcast %29 : vector<16x1xf32> to vector<16x16xf32>
    %31 = arith.subf %27, %30 : vector<16x16xf32>
    %32 = math.exp %31 : vector<16x16xf32>
    %cst_16 = arith.constant dense<0.000000e+00> : vector<16xf32>
    %33 = vector.multi_reduction <add>, %32, %cst_16 [1] : vector<16x16xf32> to vector<16xf32>
    %34 = vector.shape_cast %33 : vector<16xf32> to vector<16x1xf32>
    %35 = tpu.reciprocal %34 {approx = true} : vector<16x1xf32> -> vector<16x1xf32>
    %36 = vector.broadcast %35 : vector<16x1xf32> to vector<16x16xf32>
    %37 = arith.mulf %32, %36 : vector<16x16xf32>
    %38 = arith.truncf %37 : vector<16x16xf32> to vector<16x16xbf16>
    %cst_17 = arith.constant dense<0.000000e+00> : vector<16x32xf32>
    %39 = tpu.matmul %38, %9, %cst_17 {dimension_numbers = #tpu.dot_dimension_numbers<[1], [0], [0], [1], [0, 0, 1, 1], [], []>} : vector<16x16xbf16>, vector<16x32xbf16>, vector<16x32xf32> -> vector<16x32xf32>
    %c0_18 = arith.constant 0 : index
    %c0_19 = arith.constant 0 : index
    %40 = vector.load %arg8[%c0_18, %c0_19] : memref<4x32xf32, #tpu.memory_space<vmem>>, vector<1x32xf32>
    %41 = vector.broadcast %40 : vector<1x32xf32> to vector<16x32xf32>
    %42 = arith.mulf %39, %41 : vector<16x32xf32>
    %43 = arith.addf %16, %42 : vector<16x32xf32>
    %44 = vector.extract_strided_slice %13 {offsets = [0, 1], sizes = [16, 1], strides = [1, 1]} : vector<16x4xf32> to vector<16x1xf32>
    %45 = vector.extract_strided_slice %15 {offsets = [1, 0], sizes = [1, 16], strides = [1, 1]} : vector<4x16xf32> to vector<1x16xf32>
    %46 = vector.broadcast %44 : vector<16x1xf32> to vector<16x16xf32>
    %47 = vector.broadcast %45 : vector<1x16xf32> to vector<16x16xf32>
    %48 = arith.addf %46, %47 : vector<16x16xf32>
    %cst_20 = arith.constant 0.000000e+00 : f32
    %49 = vector.broadcast %cst_20 : f32 to vector<16x16xf32>
    %50 = arith.cmpf ogt, %48, %49 : vector<16x16xf32>
    %cst_21 = arith.constant 2.000000e-01 : f32
    %51 = vector.broadcast %cst_21 : f32 to vector<16x16xf32>
    %52 = arith.mulf %51, %48 : vector<16x16xf32>
    %53 = arith.select %50, %48, %52 : vector<16x16xi1>, vector<16x16xf32>
    %54 = arith.addf %53, %4 : vector<16x16xf32>
    %cst_22 = arith.constant dense<0xFF800000> : vector<16xf32>
    %55 = vector.multi_reduction <maximumf>, %54, %cst_22 [1] : vector<16x16xf32> to vector<16xf32>
    %56 = vector.shape_cast %55 : vector<16xf32> to vector<16x1xf32>
    %57 = vector.broadcast %56 : vector<16x1xf32> to vector<16x16xf32>
    %58 = arith.subf %54, %57 : vector<16x16xf32>
    %59 = math.exp %58 : vector<16x16xf32>
    %cst_23 = arith.constant dense<0.000000e+00> : vector<16xf32>
    %60 = vector.multi_reduction <add>, %59, %cst_23 [1] : vector<16x16xf32> to vector<16xf32>
    %61 = vector.shape_cast %60 : vector<16xf32> to vector<16x1xf32>
    %62 = tpu.reciprocal %61 {approx = true} : vector<16x1xf32> -> vector<16x1xf32>
    %63 = vector.broadcast %62 : vector<16x1xf32> to vector<16x16xf32>
    %64 = arith.mulf %59, %63 : vector<16x16xf32>
    %65 = arith.truncf %64 : vector<16x16xf32> to vector<16x16xbf16>
    %cst_24 = arith.constant dense<0.000000e+00> : vector<16x32xf32>
    %66 = tpu.matmul %65, %9, %cst_24 {dimension_numbers = #tpu.dot_dimension_numbers<[1], [0], [0], [1], [0, 0, 1, 1], [], []>} : vector<16x16xbf16>, vector<16x32xbf16>, vector<16x32xf32> -> vector<16x32xf32>
    %c1 = arith.constant 1 : index
    %c0_25 = arith.constant 0 : index
    %67 = vector.load %arg8[%c1, %c0_25] : memref<4x32xf32, #tpu.memory_space<vmem>>, vector<1x32xf32>
    %68 = vector.broadcast %67 : vector<1x32xf32> to vector<16x32xf32>
    %69 = arith.mulf %66, %68 : vector<16x32xf32>
    %70 = arith.addf %43, %69 : vector<16x32xf32>
    %71 = vector.extract_strided_slice %13 {offsets = [0, 2], sizes = [16, 1], strides = [1, 1]} : vector<16x4xf32> to vector<16x1xf32>
    %72 = vector.extract_strided_slice %15 {offsets = [2, 0], sizes = [1, 16], strides = [1, 1]} : vector<4x16xf32> to vector<1x16xf32>
    %73 = vector.broadcast %71 : vector<16x1xf32> to vector<16x16xf32>
    %74 = vector.broadcast %72 : vector<1x16xf32> to vector<16x16xf32>
    %75 = arith.addf %73, %74 : vector<16x16xf32>
    %cst_26 = arith.constant 0.000000e+00 : f32
    %76 = vector.broadcast %cst_26 : f32 to vector<16x16xf32>
    %77 = arith.cmpf ogt, %75, %76 : vector<16x16xf32>
    %cst_27 = arith.constant 2.000000e-01 : f32
    %78 = vector.broadcast %cst_27 : f32 to vector<16x16xf32>
    %79 = arith.mulf %78, %75 : vector<16x16xf32>
    %80 = arith.select %77, %75, %79 : vector<16x16xi1>, vector<16x16xf32>
    %81 = arith.addf %80, %4 : vector<16x16xf32>
    %cst_28 = arith.constant dense<0xFF800000> : vector<16xf32>
    %82 = vector.multi_reduction <maximumf>, %81, %cst_28 [1] : vector<16x16xf32> to vector<16xf32>
    %83 = vector.shape_cast %82 : vector<16xf32> to vector<16x1xf32>
    %84 = vector.broadcast %83 : vector<16x1xf32> to vector<16x16xf32>
    %85 = arith.subf %81, %84 : vector<16x16xf32>
    %86 = math.exp %85 : vector<16x16xf32>
    %cst_29 = arith.constant dense<0.000000e+00> : vector<16xf32>
    %87 = vector.multi_reduction <add>, %86, %cst_29 [1] : vector<16x16xf32> to vector<16xf32>
    %88 = vector.shape_cast %87 : vector<16xf32> to vector<16x1xf32>
    %89 = tpu.reciprocal %88 {approx = true} : vector<16x1xf32> -> vector<16x1xf32>
    %90 = vector.broadcast %89 : vector<16x1xf32> to vector<16x16xf32>
    %91 = arith.mulf %86, %90 : vector<16x16xf32>
    %92 = arith.truncf %91 : vector<16x16xf32> to vector<16x16xbf16>
    %cst_30 = arith.constant dense<0.000000e+00> : vector<16x32xf32>
    %93 = tpu.matmul %92, %9, %cst_30 {dimension_numbers = #tpu.dot_dimension_numbers<[1], [0], [0], [1], [0, 0, 1, 1], [], []>} : vector<16x16xbf16>, vector<16x32xbf16>, vector<16x32xf32> -> vector<16x32xf32>
    %c2 = arith.constant 2 : index
    %c0_31 = arith.constant 0 : index
    %94 = vector.load %arg8[%c2, %c0_31] : memref<4x32xf32, #tpu.memory_space<vmem>>, vector<1x32xf32>
    %95 = vector.broadcast %94 : vector<1x32xf32> to vector<16x32xf32>
    %96 = arith.mulf %93, %95 : vector<16x32xf32>
    %97 = arith.addf %70, %96 : vector<16x32xf32>
    %98 = vector.extract_strided_slice %13 {offsets = [0, 3], sizes = [16, 1], strides = [1, 1]} : vector<16x4xf32> to vector<16x1xf32>
    %99 = vector.extract_strided_slice %15 {offsets = [3, 0], sizes = [1, 16], strides = [1, 1]} : vector<4x16xf32> to vector<1x16xf32>
    %100 = vector.broadcast %98 : vector<16x1xf32> to vector<16x16xf32>
    %101 = vector.broadcast %99 : vector<1x16xf32> to vector<16x16xf32>
    %102 = arith.addf %100, %101 : vector<16x16xf32>
    %cst_32 = arith.constant 0.000000e+00 : f32
    %103 = vector.broadcast %cst_32 : f32 to vector<16x16xf32>
    %104 = arith.cmpf ogt, %102, %103 : vector<16x16xf32>
    %cst_33 = arith.constant 2.000000e-01 : f32
    %105 = vector.broadcast %cst_33 : f32 to vector<16x16xf32>
    %106 = arith.mulf %105, %102 : vector<16x16xf32>
    %107 = arith.select %104, %102, %106 : vector<16x16xi1>, vector<16x16xf32>
    %108 = arith.addf %107, %4 : vector<16x16xf32>
    %cst_34 = arith.constant dense<0xFF800000> : vector<16xf32>
    %109 = vector.multi_reduction <maximumf>, %108, %cst_34 [1] : vector<16x16xf32> to vector<16xf32>
    %110 = vector.shape_cast %109 : vector<16xf32> to vector<16x1xf32>
    %111 = vector.broadcast %110 : vector<16x1xf32> to vector<16x16xf32>
    %112 = arith.subf %108, %111 : vector<16x16xf32>
    %113 = math.exp %112 : vector<16x16xf32>
    %cst_35 = arith.constant dense<0.000000e+00> : vector<16xf32>
    %114 = vector.multi_reduction <add>, %113, %cst_35 [1] : vector<16x16xf32> to vector<16xf32>
    %115 = vector.shape_cast %114 : vector<16xf32> to vector<16x1xf32>
    %116 = tpu.reciprocal %115 {approx = true} : vector<16x1xf32> -> vector<16x1xf32>
    %117 = vector.broadcast %116 : vector<16x1xf32> to vector<16x16xf32>
    %118 = arith.mulf %113, %117 : vector<16x16xf32>
    %119 = arith.truncf %118 : vector<16x16xf32> to vector<16x16xbf16>
    %cst_36 = arith.constant dense<0.000000e+00> : vector<16x32xf32>
    %120 = tpu.matmul %119, %9, %cst_36 {dimension_numbers = #tpu.dot_dimension_numbers<[1], [0], [0], [1], [0, 0, 1, 1], [], []>} : vector<16x16xbf16>, vector<16x32xbf16>, vector<16x32xf32> -> vector<16x32xf32>
    %c3 = arith.constant 3 : index
    %c0_37 = arith.constant 0 : index
    %121 = vector.load %arg8[%c3, %c0_37] : memref<4x32xf32, #tpu.memory_space<vmem>>, vector<1x32xf32>
    %122 = vector.broadcast %121 : vector<1x32xf32> to vector<16x32xf32>
    %123 = arith.mulf %120, %122 : vector<16x32xf32>
    %124 = arith.addf %97, %123 : vector<16x32xf32>
    %c0_38 = arith.constant 0 : index
    %c0_39 = arith.constant 0 : index
    %125 = vector.load %arg5[%c0_38, %c0_39] : memref<3x32xf32, #tpu.memory_space<vmem>>, vector<1x32xf32>
    %126 = vector.broadcast %125 : vector<1x32xf32> to vector<16x32xf32>
    %127 = arith.addf %124, %126 : vector<16x32xf32>
    %cst_40 = arith.constant 0.000000e+00 : f32
    %128 = vector.broadcast %cst_40 : f32 to vector<16x32xf32>
    %129 = arith.maximumf %127, %128 : vector<16x32xf32>
    %130 = arith.addf %129, %1 : vector<16x32xf32>
    %cst_41 = arith.constant dense<0.000000e+00> : vector<16xf32>
    %131 = vector.multi_reduction <add>, %130, %cst_41 [1] : vector<16x32xf32> to vector<16xf32>
    %132 = vector.shape_cast %131 : vector<16xf32> to vector<16x1xf32>
    %cst_42 = arith.constant 3.200000e+01 : f32
    %133 = vector.broadcast %cst_42 : f32 to vector<16x1xf32>
    %134 = arith.divf %132, %133 : vector<16x1xf32>
    %135 = vector.broadcast %134 : vector<16x1xf32> to vector<16x32xf32>
    %136 = arith.subf %130, %135 : vector<16x32xf32>
    %137 = arith.mulf %136, %136 : vector<16x32xf32>
    %cst_43 = arith.constant dense<0.000000e+00> : vector<16xf32>
    %138 = vector.multi_reduction <add>, %137, %cst_43 [1] : vector<16x32xf32> to vector<16xf32>
    %139 = vector.shape_cast %138 : vector<16xf32> to vector<16x1xf32>
    %cst_44 = arith.constant 3.200000e+01 : f32
    %140 = vector.broadcast %cst_44 : f32 to vector<16x1xf32>
    %141 = arith.divf %139, %140 : vector<16x1xf32>
    %142 = vector.broadcast %134 : vector<16x1xf32> to vector<16x32xf32>
    %143 = arith.subf %130, %142 : vector<16x32xf32>
    %cst_45 = arith.constant 9.99999974E-6 : f32
    %144 = vector.broadcast %cst_45 : f32 to vector<16x1xf32>
    %145 = arith.addf %141, %144 : vector<16x1xf32>
    %146 = math.rsqrt %145 : vector<16x1xf32>
    %147 = vector.broadcast %146 : vector<16x1xf32> to vector<16x32xf32>
    %148 = arith.mulf %143, %147 : vector<16x32xf32>
    %c0_46 = arith.constant 0 : index
    %c0_47 = arith.constant 0 : index
    %149 = vector.load %arg6[%c0_46, %c0_47] : memref<3x32xf32, #tpu.memory_space<vmem>>, vector<1x32xf32>
    %150 = vector.broadcast %149 : vector<1x32xf32> to vector<16x32xf32>
    %151 = arith.mulf %148, %150 : vector<16x32xf32>
    %c0_48 = arith.constant 0 : index
    %c0_49 = arith.constant 0 : index
    %152 = vector.load %arg7[%c0_48, %c0_49] : memref<3x32xf32, #tpu.memory_space<vmem>>, vector<1x32xf32>
    %153 = vector.broadcast %152 : vector<1x32xf32> to vector<16x32xf32>
    %154 = arith.addf %151, %153 : vector<16x32xf32>
    %c1_50 = arith.constant 1 : index
    %c0_51 = arith.constant 0 : index
    %c0_52 = arith.constant 0 : index
    %155 = vector.load %arg3[%c1_50, %c0_51, %c0_52] : memref<3x32x32xbf16, #tpu.memory_space<vmem>>, vector<1x32x32xbf16>
    %156 = vector.shape_cast %155 : vector<1x32x32xbf16> to vector<32x32xbf16>
    %157 = arith.truncf %154 : vector<16x32xf32> to vector<16x32xbf16>
    %cst_53 = arith.constant dense<0.000000e+00> : vector<16x32xf32>
    %158 = tpu.matmul %157, %156, %cst_53 {dimension_numbers = #tpu.dot_dimension_numbers<[1], [0], [0], [1], [0, 0, 1, 1], [], []>} : vector<16x32xbf16>, vector<32x32xbf16>, vector<16x32xf32> -> vector<16x32xf32>
    %159 = arith.truncf %158 : vector<16x32xf32> to vector<16x32xbf16>
    %c1_54 = arith.constant 1 : index
    %c0_55 = arith.constant 0 : index
    %c0_56 = arith.constant 0 : index
    %160 = vector.load %arg4[%c1_54, %c0_55, %c0_56] : memref<3x32x8xbf16, #tpu.memory_space<vmem>>, vector<1x32x8xbf16>
    %161 = vector.shape_cast %160 : vector<1x32x8xbf16> to vector<32x8xbf16>
    %cst_57 = arith.constant dense<0.000000e+00> : vector<16x8xf32>
    %162 = tpu.matmul %159, %161, %cst_57 {dimension_numbers = #tpu.dot_dimension_numbers<[1], [0], [0], [1], [0, 0, 1, 1], [], []>} : vector<16x32xbf16>, vector<32x8xbf16>, vector<16x8xf32> -> vector<16x8xf32>
    %163 = vector.extract_strided_slice %162 {offsets = [0, 0], sizes = [16, 4], strides = [1, 1]} : vector<16x8xf32> to vector<16x4xf32>
    %164 = vector.extract_strided_slice %162 {offsets = [0, 4], sizes = [16, 4], strides = [1, 1]} : vector<16x8xf32> to vector<16x4xf32>
    %165 = tpu.transpose %164, [1, 0] : vector<16x4xf32> -> vector<4x16xf32>
    %cst_58 = arith.constant 0.000000e+00 : f32
    %166 = vector.broadcast %cst_58 : f32 to vector<16x32xf32>
    %167 = vector.extract_strided_slice %163 {offsets = [0, 0], sizes = [16, 1], strides = [1, 1]} : vector<16x4xf32> to vector<16x1xf32>
    %168 = vector.extract_strided_slice %165 {offsets = [0, 0], sizes = [1, 16], strides = [1, 1]} : vector<4x16xf32> to vector<1x16xf32>
    %169 = vector.broadcast %167 : vector<16x1xf32> to vector<16x16xf32>
    %170 = vector.broadcast %168 : vector<1x16xf32> to vector<16x16xf32>
    %171 = arith.addf %169, %170 : vector<16x16xf32>
    %cst_59 = arith.constant 0.000000e+00 : f32
    %172 = vector.broadcast %cst_59 : f32 to vector<16x16xf32>
    %173 = arith.cmpf ogt, %171, %172 : vector<16x16xf32>
    %cst_60 = arith.constant 2.000000e-01 : f32
    %174 = vector.broadcast %cst_60 : f32 to vector<16x16xf32>
    %175 = arith.mulf %174, %171 : vector<16x16xf32>
    %176 = arith.select %173, %171, %175 : vector<16x16xi1>, vector<16x16xf32>
    %177 = arith.addf %176, %4 : vector<16x16xf32>
    %cst_61 = arith.constant dense<0xFF800000> : vector<16xf32>
    %178 = vector.multi_reduction <maximumf>, %177, %cst_61 [1] : vector<16x16xf32> to vector<16xf32>
    %179 = vector.shape_cast %178 : vector<16xf32> to vector<16x1xf32>
    %180 = vector.broadcast %179 : vector<16x1xf32> to vector<16x16xf32>
    %181 = arith.subf %177, %180 : vector<16x16xf32>
    %182 = math.exp %181 : vector<16x16xf32>
    %cst_62 = arith.constant dense<0.000000e+00> : vector<16xf32>
    %183 = vector.multi_reduction <add>, %182, %cst_62 [1] : vector<16x16xf32> to vector<16xf32>
    %184 = vector.shape_cast %183 : vector<16xf32> to vector<16x1xf32>
    %185 = tpu.reciprocal %184 {approx = true} : vector<16x1xf32> -> vector<16x1xf32>
    %186 = vector.broadcast %185 : vector<16x1xf32> to vector<16x16xf32>
    %187 = arith.mulf %182, %186 : vector<16x16xf32>
    %188 = arith.truncf %187 : vector<16x16xf32> to vector<16x16xbf16>
    %cst_63 = arith.constant dense<0.000000e+00> : vector<16x32xf32>
    %189 = tpu.matmul %188, %159, %cst_63 {dimension_numbers = #tpu.dot_dimension_numbers<[1], [0], [0], [1], [0, 0, 1, 1], [], []>} : vector<16x16xbf16>, vector<16x32xbf16>, vector<16x32xf32> -> vector<16x32xf32>
    %c0_64 = arith.constant 0 : index
    %c0_65 = arith.constant 0 : index
    %190 = vector.load %arg8[%c0_64, %c0_65] : memref<4x32xf32, #tpu.memory_space<vmem>>, vector<1x32xf32>
    %191 = vector.broadcast %190 : vector<1x32xf32> to vector<16x32xf32>
    %192 = arith.mulf %189, %191 : vector<16x32xf32>
    %193 = arith.addf %166, %192 : vector<16x32xf32>
    %194 = vector.extract_strided_slice %163 {offsets = [0, 1], sizes = [16, 1], strides = [1, 1]} : vector<16x4xf32> to vector<16x1xf32>
    %195 = vector.extract_strided_slice %165 {offsets = [1, 0], sizes = [1, 16], strides = [1, 1]} : vector<4x16xf32> to vector<1x16xf32>
    %196 = vector.broadcast %194 : vector<16x1xf32> to vector<16x16xf32>
    %197 = vector.broadcast %195 : vector<1x16xf32> to vector<16x16xf32>
    %198 = arith.addf %196, %197 : vector<16x16xf32>
    %cst_66 = arith.constant 0.000000e+00 : f32
    %199 = vector.broadcast %cst_66 : f32 to vector<16x16xf32>
    %200 = arith.cmpf ogt, %198, %199 : vector<16x16xf32>
    %cst_67 = arith.constant 2.000000e-01 : f32
    %201 = vector.broadcast %cst_67 : f32 to vector<16x16xf32>
    %202 = arith.mulf %201, %198 : vector<16x16xf32>
    %203 = arith.select %200, %198, %202 : vector<16x16xi1>, vector<16x16xf32>
    %204 = arith.addf %203, %4 : vector<16x16xf32>
    %cst_68 = arith.constant dense<0xFF800000> : vector<16xf32>
    %205 = vector.multi_reduction <maximumf>, %204, %cst_68 [1] : vector<16x16xf32> to vector<16xf32>
    %206 = vector.shape_cast %205 : vector<16xf32> to vector<16x1xf32>
    %207 = vector.broadcast %206 : vector<16x1xf32> to vector<16x16xf32>
    %208 = arith.subf %204, %207 : vector<16x16xf32>
    %209 = math.exp %208 : vector<16x16xf32>
    %cst_69 = arith.constant dense<0.000000e+00> : vector<16xf32>
    %210 = vector.multi_reduction <add>, %209, %cst_69 [1] : vector<16x16xf32> to vector<16xf32>
    %211 = vector.shape_cast %210 : vector<16xf32> to vector<16x1xf32>
    %212 = tpu.reciprocal %211 {approx = true} : vector<16x1xf32> -> vector<16x1xf32>
    %213 = vector.broadcast %212 : vector<16x1xf32> to vector<16x16xf32>
    %214 = arith.mulf %209, %213 : vector<16x16xf32>
    %215 = arith.truncf %214 : vector<16x16xf32> to vector<16x16xbf16>
    %cst_70 = arith.constant dense<0.000000e+00> : vector<16x32xf32>
    %216 = tpu.matmul %215, %159, %cst_70 {dimension_numbers = #tpu.dot_dimension_numbers<[1], [0], [0], [1], [0, 0, 1, 1], [], []>} : vector<16x16xbf16>, vector<16x32xbf16>, vector<16x32xf32> -> vector<16x32xf32>
    %c1_71 = arith.constant 1 : index
    %c0_72 = arith.constant 0 : index
    %217 = vector.load %arg8[%c1_71, %c0_72] : memref<4x32xf32, #tpu.memory_space<vmem>>, vector<1x32xf32>
    %218 = vector.broadcast %217 : vector<1x32xf32> to vector<16x32xf32>
    %219 = arith.mulf %216, %218 : vector<16x32xf32>
    %220 = arith.addf %193, %219 : vector<16x32xf32>
    %221 = vector.extract_strided_slice %163 {offsets = [0, 2], sizes = [16, 1], strides = [1, 1]} : vector<16x4xf32> to vector<16x1xf32>
    %222 = vector.extract_strided_slice %165 {offsets = [2, 0], sizes = [1, 16], strides = [1, 1]} : vector<4x16xf32> to vector<1x16xf32>
    %223 = vector.broadcast %221 : vector<16x1xf32> to vector<16x16xf32>
    %224 = vector.broadcast %222 : vector<1x16xf32> to vector<16x16xf32>
    %225 = arith.addf %223, %224 : vector<16x16xf32>
    %cst_73 = arith.constant 0.000000e+00 : f32
    %226 = vector.broadcast %cst_73 : f32 to vector<16x16xf32>
    %227 = arith.cmpf ogt, %225, %226 : vector<16x16xf32>
    %cst_74 = arith.constant 2.000000e-01 : f32
    %228 = vector.broadcast %cst_74 : f32 to vector<16x16xf32>
    %229 = arith.mulf %228, %225 : vector<16x16xf32>
    %230 = arith.select %227, %225, %229 : vector<16x16xi1>, vector<16x16xf32>
    %231 = arith.addf %230, %4 : vector<16x16xf32>
    %cst_75 = arith.constant dense<0xFF800000> : vector<16xf32>
    %232 = vector.multi_reduction <maximumf>, %231, %cst_75 [1] : vector<16x16xf32> to vector<16xf32>
    %233 = vector.shape_cast %232 : vector<16xf32> to vector<16x1xf32>
    %234 = vector.broadcast %233 : vector<16x1xf32> to vector<16x16xf32>
    %235 = arith.subf %231, %234 : vector<16x16xf32>
    %236 = math.exp %235 : vector<16x16xf32>
    %cst_76 = arith.constant dense<0.000000e+00> : vector<16xf32>
    %237 = vector.multi_reduction <add>, %236, %cst_76 [1] : vector<16x16xf32> to vector<16xf32>
    %238 = vector.shape_cast %237 : vector<16xf32> to vector<16x1xf32>
    %239 = tpu.reciprocal %238 {approx = true} : vector<16x1xf32> -> vector<16x1xf32>
    %240 = vector.broadcast %239 : vector<16x1xf32> to vector<16x16xf32>
    %241 = arith.mulf %236, %240 : vector<16x16xf32>
    %242 = arith.truncf %241 : vector<16x16xf32> to vector<16x16xbf16>
    %cst_77 = arith.constant dense<0.000000e+00> : vector<16x32xf32>
    %243 = tpu.matmul %242, %159, %cst_77 {dimension_numbers = #tpu.dot_dimension_numbers<[1], [0], [0], [1], [0, 0, 1, 1], [], []>} : vector<16x16xbf16>, vector<16x32xbf16>, vector<16x32xf32> -> vector<16x32xf32>
    %c2_78 = arith.constant 2 : index
    %c0_79 = arith.constant 0 : index
    %244 = vector.load %arg8[%c2_78, %c0_79] : memref<4x32xf32, #tpu.memory_space<vmem>>, vector<1x32xf32>
    %245 = vector.broadcast %244 : vector<1x32xf32> to vector<16x32xf32>
    %246 = arith.mulf %243, %245 : vector<16x32xf32>
    %247 = arith.addf %220, %246 : vector<16x32xf32>
    %248 = vector.extract_strided_slice %163 {offsets = [0, 3], sizes = [16, 1], strides = [1, 1]} : vector<16x4xf32> to vector<16x1xf32>
    %249 = vector.extract_strided_slice %165 {offsets = [3, 0], sizes = [1, 16], strides = [1, 1]} : vector<4x16xf32> to vector<1x16xf32>
    %250 = vector.broadcast %248 : vector<16x1xf32> to vector<16x16xf32>
    %251 = vector.broadcast %249 : vector<1x16xf32> to vector<16x16xf32>
    %252 = arith.addf %250, %251 : vector<16x16xf32>
    %cst_80 = arith.constant 0.000000e+00 : f32
    %253 = vector.broadcast %cst_80 : f32 to vector<16x16xf32>
    %254 = arith.cmpf ogt, %252, %253 : vector<16x16xf32>
    %cst_81 = arith.constant 2.000000e-01 : f32
    %255 = vector.broadcast %cst_81 : f32 to vector<16x16xf32>
    %256 = arith.mulf %255, %252 : vector<16x16xf32>
    %257 = arith.select %254, %252, %256 : vector<16x16xi1>, vector<16x16xf32>
    %258 = arith.addf %257, %4 : vector<16x16xf32>
    %cst_82 = arith.constant dense<0xFF800000> : vector<16xf32>
    %259 = vector.multi_reduction <maximumf>, %258, %cst_82 [1] : vector<16x16xf32> to vector<16xf32>
    %260 = vector.shape_cast %259 : vector<16xf32> to vector<16x1xf32>
    %261 = vector.broadcast %260 : vector<16x1xf32> to vector<16x16xf32>
    %262 = arith.subf %258, %261 : vector<16x16xf32>
    %263 = math.exp %262 : vector<16x16xf32>
    %cst_83 = arith.constant dense<0.000000e+00> : vector<16xf32>
    %264 = vector.multi_reduction <add>, %263, %cst_83 [1] : vector<16x16xf32> to vector<16xf32>
    %265 = vector.shape_cast %264 : vector<16xf32> to vector<16x1xf32>
    %266 = tpu.reciprocal %265 {approx = true} : vector<16x1xf32> -> vector<16x1xf32>
    %267 = vector.broadcast %266 : vector<16x1xf32> to vector<16x16xf32>
    %268 = arith.mulf %263, %267 : vector<16x16xf32>
    %269 = arith.truncf %268 : vector<16x16xf32> to vector<16x16xbf16>
    %cst_84 = arith.constant dense<0.000000e+00> : vector<16x32xf32>
    %270 = tpu.matmul %269, %159, %cst_84 {dimension_numbers = #tpu.dot_dimension_numbers<[1], [0], [0], [1], [0, 0, 1, 1], [], []>} : vector<16x16xbf16>, vector<16x32xbf16>, vector<16x32xf32> -> vector<16x32xf32>
    %c3_85 = arith.constant 3 : index
    %c0_86 = arith.constant 0 : index
    %271 = vector.load %arg8[%c3_85, %c0_86] : memref<4x32xf32, #tpu.memory_space<vmem>>, vector<1x32xf32>
    %272 = vector.broadcast %271 : vector<1x32xf32> to vector<16x32xf32>
    %273 = arith.mulf %270, %272 : vector<16x32xf32>
    %274 = arith.addf %247, %273 : vector<16x32xf32>
    %c1_87 = arith.constant 1 : index
    %c0_88 = arith.constant 0 : index
    %275 = vector.load %arg5[%c1_87, %c0_88] : memref<3x32xf32, #tpu.memory_space<vmem>>, vector<1x32xf32>
    %276 = vector.broadcast %275 : vector<1x32xf32> to vector<16x32xf32>
    %277 = arith.addf %274, %276 : vector<16x32xf32>
    %cst_89 = arith.constant 0.000000e+00 : f32
    %278 = vector.broadcast %cst_89 : f32 to vector<16x32xf32>
    %279 = arith.maximumf %277, %278 : vector<16x32xf32>
    %280 = arith.addf %279, %154 : vector<16x32xf32>
    %cst_90 = arith.constant dense<0.000000e+00> : vector<16xf32>
    %281 = vector.multi_reduction <add>, %280, %cst_90 [1] : vector<16x32xf32> to vector<16xf32>
    %282 = vector.shape_cast %281 : vector<16xf32> to vector<16x1xf32>
    %cst_91 = arith.constant 3.200000e+01 : f32
    %283 = vector.broadcast %cst_91 : f32 to vector<16x1xf32>
    %284 = arith.divf %282, %283 : vector<16x1xf32>
    %285 = vector.broadcast %284 : vector<16x1xf32> to vector<16x32xf32>
    %286 = arith.subf %280, %285 : vector<16x32xf32>
    %287 = arith.mulf %286, %286 : vector<16x32xf32>
    %cst_92 = arith.constant dense<0.000000e+00> : vector<16xf32>
    %288 = vector.multi_reduction <add>, %287, %cst_92 [1] : vector<16x32xf32> to vector<16xf32>
    %289 = vector.shape_cast %288 : vector<16xf32> to vector<16x1xf32>
    %cst_93 = arith.constant 3.200000e+01 : f32
    %290 = vector.broadcast %cst_93 : f32 to vector<16x1xf32>
    %291 = arith.divf %289, %290 : vector<16x1xf32>
    %292 = vector.broadcast %284 : vector<16x1xf32> to vector<16x32xf32>
    %293 = arith.subf %280, %292 : vector<16x32xf32>
    %cst_94 = arith.constant 9.99999974E-6 : f32
    %294 = vector.broadcast %cst_94 : f32 to vector<16x1xf32>
    %295 = arith.addf %291, %294 : vector<16x1xf32>
    %296 = math.rsqrt %295 : vector<16x1xf32>
    %297 = vector.broadcast %296 : vector<16x1xf32> to vector<16x32xf32>
    %298 = arith.mulf %293, %297 : vector<16x32xf32>
    %c1_95 = arith.constant 1 : index
    %c0_96 = arith.constant 0 : index
    %299 = vector.load %arg6[%c1_95, %c0_96] : memref<3x32xf32, #tpu.memory_space<vmem>>, vector<1x32xf32>
    %300 = vector.broadcast %299 : vector<1x32xf32> to vector<16x32xf32>
    %301 = arith.mulf %298, %300 : vector<16x32xf32>
    %c1_97 = arith.constant 1 : index
    %c0_98 = arith.constant 0 : index
    %302 = vector.load %arg7[%c1_97, %c0_98] : memref<3x32xf32, #tpu.memory_space<vmem>>, vector<1x32xf32>
    %303 = vector.broadcast %302 : vector<1x32xf32> to vector<16x32xf32>
    %304 = arith.addf %301, %303 : vector<16x32xf32>
    %c2_99 = arith.constant 2 : index
    %c0_100 = arith.constant 0 : index
    %c0_101 = arith.constant 0 : index
    %305 = vector.load %arg3[%c2_99, %c0_100, %c0_101] : memref<3x32x32xbf16, #tpu.memory_space<vmem>>, vector<1x32x32xbf16>
    %306 = vector.shape_cast %305 : vector<1x32x32xbf16> to vector<32x32xbf16>
    %307 = arith.truncf %304 : vector<16x32xf32> to vector<16x32xbf16>
    %cst_102 = arith.constant dense<0.000000e+00> : vector<16x32xf32>
    %308 = tpu.matmul %307, %306, %cst_102 {dimension_numbers = #tpu.dot_dimension_numbers<[1], [0], [0], [1], [0, 0, 1, 1], [], []>} : vector<16x32xbf16>, vector<32x32xbf16>, vector<16x32xf32> -> vector<16x32xf32>
    %309 = arith.truncf %308 : vector<16x32xf32> to vector<16x32xbf16>
    %c2_103 = arith.constant 2 : index
    %c0_104 = arith.constant 0 : index
    %c0_105 = arith.constant 0 : index
    %310 = vector.load %arg4[%c2_103, %c0_104, %c0_105] : memref<3x32x8xbf16, #tpu.memory_space<vmem>>, vector<1x32x8xbf16>
    %311 = vector.shape_cast %310 : vector<1x32x8xbf16> to vector<32x8xbf16>
    %cst_106 = arith.constant dense<0.000000e+00> : vector<16x8xf32>
    %312 = tpu.matmul %309, %311, %cst_106 {dimension_numbers = #tpu.dot_dimension_numbers<[1], [0], [0], [1], [0, 0, 1, 1], [], []>} : vector<16x32xbf16>, vector<32x8xbf16>, vector<16x8xf32> -> vector<16x8xf32>
    %313 = vector.extract_strided_slice %312 {offsets = [0, 0], sizes = [16, 4], strides = [1, 1]} : vector<16x8xf32> to vector<16x4xf32>
    %314 = vector.extract_strided_slice %312 {offsets = [0, 4], sizes = [16, 4], strides = [1, 1]} : vector<16x8xf32> to vector<16x4xf32>
    %315 = tpu.transpose %314, [1, 0] : vector<16x4xf32> -> vector<4x16xf32>
    %cst_107 = arith.constant 0.000000e+00 : f32
    %316 = vector.broadcast %cst_107 : f32 to vector<16x32xf32>
    %317 = vector.extract_strided_slice %313 {offsets = [0, 0], sizes = [16, 1], strides = [1, 1]} : vector<16x4xf32> to vector<16x1xf32>
    %318 = vector.extract_strided_slice %315 {offsets = [0, 0], sizes = [1, 16], strides = [1, 1]} : vector<4x16xf32> to vector<1x16xf32>
    %319 = vector.broadcast %317 : vector<16x1xf32> to vector<16x16xf32>
    %320 = vector.broadcast %318 : vector<1x16xf32> to vector<16x16xf32>
    %321 = arith.addf %319, %320 : vector<16x16xf32>
    %cst_108 = arith.constant 0.000000e+00 : f32
    %322 = vector.broadcast %cst_108 : f32 to vector<16x16xf32>
    %323 = arith.cmpf ogt, %321, %322 : vector<16x16xf32>
    %cst_109 = arith.constant 2.000000e-01 : f32
    %324 = vector.broadcast %cst_109 : f32 to vector<16x16xf32>
    %325 = arith.mulf %324, %321 : vector<16x16xf32>
    %326 = arith.select %323, %321, %325 : vector<16x16xi1>, vector<16x16xf32>
    %327 = arith.addf %326, %4 : vector<16x16xf32>
    %cst_110 = arith.constant dense<0xFF800000> : vector<16xf32>
    %328 = vector.multi_reduction <maximumf>, %327, %cst_110 [1] : vector<16x16xf32> to vector<16xf32>
    %329 = vector.shape_cast %328 : vector<16xf32> to vector<16x1xf32>
    %330 = vector.broadcast %329 : vector<16x1xf32> to vector<16x16xf32>
    %331 = arith.subf %327, %330 : vector<16x16xf32>
    %332 = math.exp %331 : vector<16x16xf32>
    %cst_111 = arith.constant dense<0.000000e+00> : vector<16xf32>
    %333 = vector.multi_reduction <add>, %332, %cst_111 [1] : vector<16x16xf32> to vector<16xf32>
    %334 = vector.shape_cast %333 : vector<16xf32> to vector<16x1xf32>
    %335 = tpu.reciprocal %334 {approx = true} : vector<16x1xf32> -> vector<16x1xf32>
    %336 = vector.broadcast %335 : vector<16x1xf32> to vector<16x16xf32>
    %337 = arith.mulf %332, %336 : vector<16x16xf32>
    %338 = arith.truncf %337 : vector<16x16xf32> to vector<16x16xbf16>
    %cst_112 = arith.constant dense<0.000000e+00> : vector<16x32xf32>
    %339 = tpu.matmul %338, %309, %cst_112 {dimension_numbers = #tpu.dot_dimension_numbers<[1], [0], [0], [1], [0, 0, 1, 1], [], []>} : vector<16x16xbf16>, vector<16x32xbf16>, vector<16x32xf32> -> vector<16x32xf32>
    %c0_113 = arith.constant 0 : index
    %c0_114 = arith.constant 0 : index
    %340 = vector.load %arg8[%c0_113, %c0_114] : memref<4x32xf32, #tpu.memory_space<vmem>>, vector<1x32xf32>
    %341 = vector.broadcast %340 : vector<1x32xf32> to vector<16x32xf32>
    %342 = arith.mulf %339, %341 : vector<16x32xf32>
    %343 = arith.addf %316, %342 : vector<16x32xf32>
    %344 = vector.extract_strided_slice %313 {offsets = [0, 1], sizes = [16, 1], strides = [1, 1]} : vector<16x4xf32> to vector<16x1xf32>
    %345 = vector.extract_strided_slice %315 {offsets = [1, 0], sizes = [1, 16], strides = [1, 1]} : vector<4x16xf32> to vector<1x16xf32>
    %346 = vector.broadcast %344 : vector<16x1xf32> to vector<16x16xf32>
    %347 = vector.broadcast %345 : vector<1x16xf32> to vector<16x16xf32>
    %348 = arith.addf %346, %347 : vector<16x16xf32>
    %cst_115 = arith.constant 0.000000e+00 : f32
    %349 = vector.broadcast %cst_115 : f32 to vector<16x16xf32>
    %350 = arith.cmpf ogt, %348, %349 : vector<16x16xf32>
    %cst_116 = arith.constant 2.000000e-01 : f32
    %351 = vector.broadcast %cst_116 : f32 to vector<16x16xf32>
    %352 = arith.mulf %351, %348 : vector<16x16xf32>
    %353 = arith.select %350, %348, %352 : vector<16x16xi1>, vector<16x16xf32>
    %354 = arith.addf %353, %4 : vector<16x16xf32>
    %cst_117 = arith.constant dense<0xFF800000> : vector<16xf32>
    %355 = vector.multi_reduction <maximumf>, %354, %cst_117 [1] : vector<16x16xf32> to vector<16xf32>
    %356 = vector.shape_cast %355 : vector<16xf32> to vector<16x1xf32>
    %357 = vector.broadcast %356 : vector<16x1xf32> to vector<16x16xf32>
    %358 = arith.subf %354, %357 : vector<16x16xf32>
    %359 = math.exp %358 : vector<16x16xf32>
    %cst_118 = arith.constant dense<0.000000e+00> : vector<16xf32>
    %360 = vector.multi_reduction <add>, %359, %cst_118 [1] : vector<16x16xf32> to vector<16xf32>
    %361 = vector.shape_cast %360 : vector<16xf32> to vector<16x1xf32>
    %362 = tpu.reciprocal %361 {approx = true} : vector<16x1xf32> -> vector<16x1xf32>
    %363 = vector.broadcast %362 : vector<16x1xf32> to vector<16x16xf32>
    %364 = arith.mulf %359, %363 : vector<16x16xf32>
    %365 = arith.truncf %364 : vector<16x16xf32> to vector<16x16xbf16>
    %cst_119 = arith.constant dense<0.000000e+00> : vector<16x32xf32>
    %366 = tpu.matmul %365, %309, %cst_119 {dimension_numbers = #tpu.dot_dimension_numbers<[1], [0], [0], [1], [0, 0, 1, 1], [], []>} : vector<16x16xbf16>, vector<16x32xbf16>, vector<16x32xf32> -> vector<16x32xf32>
    %c1_120 = arith.constant 1 : index
    %c0_121 = arith.constant 0 : index
    %367 = vector.load %arg8[%c1_120, %c0_121] : memref<4x32xf32, #tpu.memory_space<vmem>>, vector<1x32xf32>
    %368 = vector.broadcast %367 : vector<1x32xf32> to vector<16x32xf32>
    %369 = arith.mulf %366, %368 : vector<16x32xf32>
    %370 = arith.addf %343, %369 : vector<16x32xf32>
    %371 = vector.extract_strided_slice %313 {offsets = [0, 2], sizes = [16, 1], strides = [1, 1]} : vector<16x4xf32> to vector<16x1xf32>
    %372 = vector.extract_strided_slice %315 {offsets = [2, 0], sizes = [1, 16], strides = [1, 1]} : vector<4x16xf32> to vector<1x16xf32>
    %373 = vector.broadcast %371 : vector<16x1xf32> to vector<16x16xf32>
    %374 = vector.broadcast %372 : vector<1x16xf32> to vector<16x16xf32>
    %375 = arith.addf %373, %374 : vector<16x16xf32>
    %cst_122 = arith.constant 0.000000e+00 : f32
    %376 = vector.broadcast %cst_122 : f32 to vector<16x16xf32>
    %377 = arith.cmpf ogt, %375, %376 : vector<16x16xf32>
    %cst_123 = arith.constant 2.000000e-01 : f32
    %378 = vector.broadcast %cst_123 : f32 to vector<16x16xf32>
    %379 = arith.mulf %378, %375 : vector<16x16xf32>
    %380 = arith.select %377, %375, %379 : vector<16x16xi1>, vector<16x16xf32>
    %381 = arith.addf %380, %4 : vector<16x16xf32>
    %cst_124 = arith.constant dense<0xFF800000> : vector<16xf32>
    %382 = vector.multi_reduction <maximumf>, %381, %cst_124 [1] : vector<16x16xf32> to vector<16xf32>
    %383 = vector.shape_cast %382 : vector<16xf32> to vector<16x1xf32>
    %384 = vector.broadcast %383 : vector<16x1xf32> to vector<16x16xf32>
    %385 = arith.subf %381, %384 : vector<16x16xf32>
    %386 = math.exp %385 : vector<16x16xf32>
    %cst_125 = arith.constant dense<0.000000e+00> : vector<16xf32>
    %387 = vector.multi_reduction <add>, %386, %cst_125 [1] : vector<16x16xf32> to vector<16xf32>
    %388 = vector.shape_cast %387 : vector<16xf32> to vector<16x1xf32>
    %389 = tpu.reciprocal %388 {approx = true} : vector<16x1xf32> -> vector<16x1xf32>
    %390 = vector.broadcast %389 : vector<16x1xf32> to vector<16x16xf32>
    %391 = arith.mulf %386, %390 : vector<16x16xf32>
    %392 = arith.truncf %391 : vector<16x16xf32> to vector<16x16xbf16>
    %cst_126 = arith.constant dense<0.000000e+00> : vector<16x32xf32>
    %393 = tpu.matmul %392, %309, %cst_126 {dimension_numbers = #tpu.dot_dimension_numbers<[1], [0], [0], [1], [0, 0, 1, 1], [], []>} : vector<16x16xbf16>, vector<16x32xbf16>, vector<16x32xf32> -> vector<16x32xf32>
    %c2_127 = arith.constant 2 : index
    %c0_128 = arith.constant 0 : index
    %394 = vector.load %arg8[%c2_127, %c0_128] : memref<4x32xf32, #tpu.memory_space<vmem>>, vector<1x32xf32>
    %395 = vector.broadcast %394 : vector<1x32xf32> to vector<16x32xf32>
    %396 = arith.mulf %393, %395 : vector<16x32xf32>
    %397 = arith.addf %370, %396 : vector<16x32xf32>
    %398 = vector.extract_strided_slice %313 {offsets = [0, 3], sizes = [16, 1], strides = [1, 1]} : vector<16x4xf32> to vector<16x1xf32>
    %399 = vector.extract_strided_slice %315 {offsets = [3, 0], sizes = [1, 16], strides = [1, 1]} : vector<4x16xf32> to vector<1x16xf32>
    %400 = vector.broadcast %398 : vector<16x1xf32> to vector<16x16xf32>
    %401 = vector.broadcast %399 : vector<1x16xf32> to vector<16x16xf32>
    %402 = arith.addf %400, %401 : vector<16x16xf32>
    %cst_129 = arith.constant 0.000000e+00 : f32
    %403 = vector.broadcast %cst_129 : f32 to vector<16x16xf32>
    %404 = arith.cmpf ogt, %402, %403 : vector<16x16xf32>
    %cst_130 = arith.constant 2.000000e-01 : f32
    %405 = vector.broadcast %cst_130 : f32 to vector<16x16xf32>
    %406 = arith.mulf %405, %402 : vector<16x16xf32>
    %407 = arith.select %404, %402, %406 : vector<16x16xi1>, vector<16x16xf32>
    %408 = arith.addf %407, %4 : vector<16x16xf32>
    %cst_131 = arith.constant dense<0xFF800000> : vector<16xf32>
    %409 = vector.multi_reduction <maximumf>, %408, %cst_131 [1] : vector<16x16xf32> to vector<16xf32>
    %410 = vector.shape_cast %409 : vector<16xf32> to vector<16x1xf32>
    %411 = vector.broadcast %410 : vector<16x1xf32> to vector<16x16xf32>
    %412 = arith.subf %408, %411 : vector<16x16xf32>
    %413 = math.exp %412 : vector<16x16xf32>
    %cst_132 = arith.constant dense<0.000000e+00> : vector<16xf32>
    %414 = vector.multi_reduction <add>, %413, %cst_132 [1] : vector<16x16xf32> to vector<16xf32>
    %415 = vector.shape_cast %414 : vector<16xf32> to vector<16x1xf32>
    %416 = tpu.reciprocal %415 {approx = true} : vector<16x1xf32> -> vector<16x1xf32>
    %417 = vector.broadcast %416 : vector<16x1xf32> to vector<16x16xf32>
    %418 = arith.mulf %413, %417 : vector<16x16xf32>
    %419 = arith.truncf %418 : vector<16x16xf32> to vector<16x16xbf16>
    %cst_133 = arith.constant dense<0.000000e+00> : vector<16x32xf32>
    %420 = tpu.matmul %419, %309, %cst_133 {dimension_numbers = #tpu.dot_dimension_numbers<[1], [0], [0], [1], [0, 0, 1, 1], [], []>} : vector<16x16xbf16>, vector<16x32xbf16>, vector<16x32xf32> -> vector<16x32xf32>
    %c3_134 = arith.constant 3 : index
    %c0_135 = arith.constant 0 : index
    %421 = vector.load %arg8[%c3_134, %c0_135] : memref<4x32xf32, #tpu.memory_space<vmem>>, vector<1x32xf32>
    %422 = vector.broadcast %421 : vector<1x32xf32> to vector<16x32xf32>
    %423 = arith.mulf %420, %422 : vector<16x32xf32>
    %424 = arith.addf %397, %423 : vector<16x32xf32>
    %c2_136 = arith.constant 2 : index
    %c0_137 = arith.constant 0 : index
    %425 = vector.load %arg5[%c2_136, %c0_137] : memref<3x32xf32, #tpu.memory_space<vmem>>, vector<1x32xf32>
    %426 = vector.broadcast %425 : vector<1x32xf32> to vector<16x32xf32>
    %427 = arith.addf %424, %426 : vector<16x32xf32>
    %cst_138 = arith.constant 0.000000e+00 : f32
    %428 = vector.broadcast %cst_138 : f32 to vector<16x32xf32>
    %429 = arith.maximumf %427, %428 : vector<16x32xf32>
    %430 = arith.addf %429, %304 : vector<16x32xf32>
    %cst_139 = arith.constant dense<0.000000e+00> : vector<16xf32>
    %431 = vector.multi_reduction <add>, %430, %cst_139 [1] : vector<16x32xf32> to vector<16xf32>
    %432 = vector.shape_cast %431 : vector<16xf32> to vector<16x1xf32>
    %cst_140 = arith.constant 3.200000e+01 : f32
    %433 = vector.broadcast %cst_140 : f32 to vector<16x1xf32>
    %434 = arith.divf %432, %433 : vector<16x1xf32>
    %435 = vector.broadcast %434 : vector<16x1xf32> to vector<16x32xf32>
    %436 = arith.subf %430, %435 : vector<16x32xf32>
    %437 = arith.mulf %436, %436 : vector<16x32xf32>
    %cst_141 = arith.constant dense<0.000000e+00> : vector<16xf32>
    %438 = vector.multi_reduction <add>, %437, %cst_141 [1] : vector<16x32xf32> to vector<16xf32>
    %439 = vector.shape_cast %438 : vector<16xf32> to vector<16x1xf32>
    %cst_142 = arith.constant 3.200000e+01 : f32
    %440 = vector.broadcast %cst_142 : f32 to vector<16x1xf32>
    %441 = arith.divf %439, %440 : vector<16x1xf32>
    %442 = vector.broadcast %434 : vector<16x1xf32> to vector<16x32xf32>
    %443 = arith.subf %430, %442 : vector<16x32xf32>
    %cst_143 = arith.constant 9.99999974E-6 : f32
    %444 = vector.broadcast %cst_143 : f32 to vector<16x1xf32>
    %445 = arith.addf %441, %444 : vector<16x1xf32>
    %446 = math.rsqrt %445 : vector<16x1xf32>
    %447 = vector.broadcast %446 : vector<16x1xf32> to vector<16x32xf32>
    %448 = arith.mulf %443, %447 : vector<16x32xf32>
    %c2_144 = arith.constant 2 : index
    %c0_145 = arith.constant 0 : index
    %449 = vector.load %arg6[%c2_144, %c0_145] : memref<3x32xf32, #tpu.memory_space<vmem>>, vector<1x32xf32>
    %450 = vector.broadcast %449 : vector<1x32xf32> to vector<16x32xf32>
    %451 = arith.mulf %448, %450 : vector<16x32xf32>
    %c2_146 = arith.constant 2 : index
    %c0_147 = arith.constant 0 : index
    %452 = vector.load %arg7[%c2_146, %c0_147] : memref<3x32xf32, #tpu.memory_space<vmem>>, vector<1x32xf32>
    %453 = vector.broadcast %452 : vector<1x32xf32> to vector<16x32xf32>
    %454 = arith.addf %451, %453 : vector<16x32xf32>
    %455 = vector.shape_cast %454 : vector<16x32xf32> to vector<1x16x32xf32>
    %c0_148 = arith.constant 0 : index
    %c0_149 = arith.constant 0 : index
    %c0_150 = arith.constant 0 : index
    %456 = vector.load %arg9[%c0_148, %c0_149, %c0_150] : memref<1x16x32xf32, #tpu.memory_space<vmem>>, vector<1x16x32xf32>
    tpu.vector_store %arg9[%c0_148, %c0_149, %c0_150], %455 {strides = array<i32>} : memref<1x16x32xf32, #tpu.memory_space<vmem>>, vector<1x16x32xf32>,
    return
  }
  func.func @transform_0(%arg0: i32) -> (i32, i32, i32) {
    %c0_i32 = arith.constant 0 : i32
    %c0_i32_0 = arith.constant 0 : i32
    %c0_i32_1 = arith.constant 0 : i32
    return %arg0, %c0_i32, %c0_i32_0 : i32, i32, i32
  }
  func.func @transform_1(%arg0: i32) -> (i32, i32, i32) {
    %c0_i32 = arith.constant 0 : i32
    %c0_i32_0 = arith.constant 0 : i32
    %c0_i32_1 = arith.constant 0 : i32
    return %arg0, %c0_i32, %c0_i32_0 : i32, i32, i32
  }
  func.func @transform_2(%arg0: i32) -> (i32, i32, i32) {
    %c0_i32 = arith.constant 0 : i32
    %c0_i32_0 = arith.constant 0 : i32
    %c0_i32_1 = arith.constant 0 : i32
    %c0_i32_2 = arith.constant 0 : i32
    return %c0_i32, %c0_i32_0, %c0_i32_1 : i32, i32, i32
  }
  func.func @transform_3(%arg0: i32) -> (i32, i32, i32) {
    %c0_i32 = arith.constant 0 : i32
    %c0_i32_0 = arith.constant 0 : i32
    %c0_i32_1 = arith.constant 0 : i32
    %c0_i32_2 = arith.constant 0 : i32
    return %c0_i32, %c0_i32_0, %c0_i32_1 : i32, i32, i32
  }
  func.func @transform_4(%arg0: i32) -> (i32, i32) {
    %c0_i32 = arith.constant 0 : i32
    %c0_i32_0 = arith.constant 0 : i32
    %c0_i32_1 = arith.constant 0 : i32
    return %c0_i32, %c0_i32_0 : i32, i32
  }
  func.func @transform_5(%arg0: i32) -> (i32, i32) {
    %c0_i32 = arith.constant 0 : i32
    %c0_i32_0 = arith.constant 0 : i32
    %c0_i32_1 = arith.constant 0 : i32
    return %c0_i32, %c0_i32_0 : i32, i32
  }
  func.func @transform_6(%arg0: i32) -> (i32, i32) {
    %c0_i32 = arith.constant 0 : i32
    %c0_i32_0 = arith.constant 0 : i32
    %c0_i32_1 = arith.constant 0 : i32
    return %c0_i32, %c0_i32_0 : i32, i32
  }
  func.func @transform_7(%arg0: i32) -> (i32, i32) {
    %c0_i32 = arith.constant 0 : i32
    %c0_i32_0 = arith.constant 0 : i32
    %c0_i32_1 = arith.constant 0 : i32
    return %c0_i32, %c0_i32_0 : i32, i32
  }
  func.func @transform_8(%arg0: i32) -> (i32, i32, i32) {
    %c0_i32 = arith.constant 0 : i32
    %c0_i32_0 = arith.constant 0 : i32
    %c0_i32_1 = arith.constant 0 : i32
    return %arg0, %c0_i32, %c0_i32_0 : i32, i32, i32
  }
}

</mosaic_0001>

<bundles_post_ra>
// kernel: tpu_custom_call.1
= control target key start
LH: loop header
LB: loop body
LE: loop exit
PB: predicated region body
PF: predicated region fallthrough
CT: control target
= control target key end

     0   :  { %13 = vsyncpa [#allocation3], 0  ;;  %s3380_s0 = inlined_call_operand.hbm [shape: f32[2,16,32], index: 0, kind: input, shape index: {}]   ;;  %s3381_s1 = inlined_call_operand.vmem [shape: bf16[2,16,16], index: 1, kind: input, shape index: {}]   ;;  %s3382_s2 = inlined_call_operand.vmem [shape: bf16[3,32,32], index: 2, kind: input, shape index: {}]   ;;  %s3383_s3 = inlined_call_operand.vmem [shape: bf16[3,32,8], index: 3, kind: input, shape index: {}]   ;;  %s3384_s4 = inlined_call_operand.vmem [shape: f32[3,32], index: 4, kind: input, shape index: {}]   ;;  %s3385_s5 = inlined_call_operand.vmem [shape: f32[3,32], index: 5, kind: input, shape index: {}]   ;;  %s3386_s6 = inlined_call_operand.vmem [shape: f32[3,32], index: 6, kind: input, shape index: {}]   ;;  %s3387_s7 = inlined_call_operand.vmem [shape: f32[4,32], index: 7, kind: input, shape index: {}]   ;;  %s3388_s8 = inlined_call_operand.hbm [shape: f32[2,16,32], index: 8, kind: output, shape index: {}]  }
   0x1   :  { %15 = vsyncpa [#allocation3 + $0x1], 0 }
   0x2   :  { %16 = vsyncpa [#allocation4], 0 }
   0x3   :  { %18 = vsyncpa [#allocation4 + $0x1], 0  ;;  %s2837_s27 = smov 0   ;;  %s2839_s28 = smov 0  }
   0x4   :  { %s2841_s29 = smov 0   ;;  %s2843_s30 = smov 0  }
   0x5 LB: > { %s2858_s9 = sadd.s32 4294967295, %s2777_s30   ;;  %s2234_s10 = sadd.s32 4294967294, %s2777_s30   ;;  %s2777_s30 = sphi %s2843_s30, %s3401_s30   ;;  %s2773_s29 = sphi %s2841_s29, %s3400_s29   ;;  %s2769_s28 = sphi %s2839_s28, %s3399_s28   ;;  %s2765_s27 = sphi %s2837_s27, %s3398_s27  }
   0x6   : > { %s2862_s11 = sadd.s32 1, %s2777_s30   ;;  %s31_s12 = sadd.s32 1, %s2773_s29 }
   0x7   : > { %s28_s13 = ssub.s32 %s2777_s30, %s2862_s11  ;;  %p38_p0 = scmp.ne.s32.totalorder %s2773_s29, %s2769_s28 }
   0x8   : > { %p29_p1 = scmp.eq.s32.totalorder %s28_s13, 0  ;;  %p39_p2 = scmp.eq.s32.totalorder %s2777_s30, 0 }
   0x9   : > { %p44_p3 = scmp.ne.s32.totalorder %s2769_s28, %s2765_s27  ;;  %p45_p4 = scmp.eq.s32.totalorder %s2858_s9, 0 }
   0xa   : > { %s2874_s14 = scalar_select %p29_p1, %s2773_s29, %s31_s12  }
   0xb   : > { %p2876_p5 = por %p39_p2, %p38_p0  ;;  %p2880_p6 = por %p45_p4, %p44_p3 }
   0xc   : > { %p220_p7 = scmp.eq.s32.totalorder %s2858_s9, 1  ;;  %p226_p8 = scmp.eq.s32.totalorder %s2234_s10, 1 }
   0xd   : > { %p2490_p10 = scmp.lt.s32.totalorder %s2777_s30, 2  ;;  %s264_s19 = sand.u32 1, %s2773_s29  }
   0xe   : > { %p2887_p11 = por %p220_p7, %p38_p0  ;;  %p2891_p12 = por %p226_p8, %p44_p3 }
   0xf   : > { %s2309_s20 = sshll.u32 %s2777_s30, 8  ;;  %s2237_s21 = sshll.u32 %s264_s19, 4 }
  0x10   : > { %s3392_s17 = scalar_select %p2887_p11, 1, 0 }
  0x11   : > { %s3393_s18 = scalar_select %p2891_p12, 1, 0 }
  0x12   : > { %s2900_s24 = scalar_lea.hbm %s3380_s0, %s2309_s20  ;;  %s268_s25 = scalar_lea.vmem [#allocation2], %s2237_s21 }
  0x13   : > { %s275_s26 = sshll.u32 %s268_s25, 4  ;;  %p2904_p13 = pnand %p2490_p10, %p2876_p5  ;;  %s2908_s26 = int_to_ptr.vmem [resolvable:$true] %s275_s26 }
  0x14   : > { %s2910_s12 = scalar_lea.sflag [#allocation3], %s264_s19  ;;  %s2681_s13 = scalar_lea.hbm %s2900_s24, 256 }
  0x15   : > { %p2682_p0 = scmp.ne.s32.totalorder %s2900_s24, %s2681_s13  ;;  %p2683_p1 = pneg %p2904_p13 }
  0x16   : > { %s2686_s21 = scalar_lea.hbm %s3380_s0, 512  ;;  %p2687_p4 = scmp.lt.u32.totalorder %s2900_s24, %s3380_s0 }
  0x17   : > { %p2684_p2 = pnand %p2683_p1, %p2682_p0  ;;  %p2688_p5 = scmp.lt.u32.totalorder %s2686_s21, %s2681_s13 }
  0x18   : > { %p2690_p8 = scmp.lt.u32.totalorder %s2681_s13, %s2900_s24 }
  0x19   : > { %p2685_p3 = pneg %p2684_p2  ;;  %p2689_p7 = por %p2688_p5, %p2687_p4 }
  0x1b   : > { %p2691_p10 = por %p2690_p8, %p2689_p7 }
  0x1d   : > { %p2692_p9 = pnand %p2691_p10, %p2685_p3 }
  0x1f   : > { %2695 = shalt.err (!%p2692_p9)
}
  0x20   : > { %s2696_s19 = scalar_lea.vmem %s2908_s26, 256  ;;  %s2779_s25 = smov [#allocation2]  }
  0x21   : > { %p2697_p0 = scmp.ne.s32.totalorder %s2908_s26, %s2696_s19  ;;  %s2701_s20 = sshll.u32 %s2779_s25, 4  ;;  %s2702_s20 = int_to_ptr.vmem [resolvable:$false] %s2701_s20 }
  0x22   : > { %s2703_s15 = scalar_lea.vmem %s2702_s20, 512  ;;  %p2704_p11 = scmp.lt.s32.totalorder %s2908_s26, %s2702_s20 }
  0x23   : > { %p2699_p2 = pnand %p2697_p0, %p2683_p1  ;;  %p2705_p4 = scmp.lt.s32.totalorder %s2703_s15, %s2696_s19 }
  0x25   : > { %p2700_p12 = pneg %p2699_p2  ;;  %p2706_p5 = por %p2705_p4, %p2704_p11 }
  0x27   : > { %p2707_p7 = pnand %p2706_p5, %p2700_p12 }
  0x29   : > { %2710 = shalt.err (!%p2707_p7)
}
  0x2a   : > { %s2780_s13 = smov 128   ;;  %s2781_s21 = smov 8  }
  0x2b   : > { %2485 = dma.hbm_to_vmem [thread:$0]  (!%p2904_p13), %s2900_s24, 256, %s2908_s26, %s2910_s12, %s2780_s13, %s2780_s13, %s2781_s21  }
  0x2c   : > { %p2240_p9 = scmp.ge.s32.totalorder %s2777_s30, 1  ;;  %p291_p1 = scmp.lt.s32.totalorder %s2777_s30, 3 }
  0x2e   : > { %p292_p3 = pnand %p2240_p9, %p291_p1 }
  0x2f   : > { %s2941_s22 = sand.u32 (!%p292_p3), 1, %s2769_s28  }
  0x30   : > { %295 = sbr.rel (%p292_p3) target bundleno = 4759 (0x1297), region = 52  ;;  %s2241_s23 = sshll.u32 (!%p292_p3), %s2941_s22, 4 }
  0x31   : > { %s298_s19 = scalar_lea.sflag (!%p292_p3), [#allocation3], %s2941_s22  ;;  %s301_s25 = scalar_lea.vmem (!%p292_p3), [#allocation2], %s2241_s23 }
  0x37   : > { %2756 = dma.done.wait (%p2880_p6), %s298_s19, 256  }
  0x38   : > { %2758 = vsyncadd (%p2880_p6), %s298_s19, 4294967040  ;;  %v2782_v0 = vmov 0.0   ;;  %vm2783_vm0 = vmmov 0   ;;  %v2557_v1 = vld [vmem:[%s3382_s2] sm:$0xff]   ;;  %v2558_v2 = vld [vmem:[%s3382_s2 + $0x8] sm:$0xff]   ;;  %vm368_vm1 = vcmask 261120   ;;  %v522_v24 = vlaneseq }
  0x39   : > { %2358 = vmatprep.subr.bf16.mxu0 %v2782_v0  ;;  %2362 = vmatprep.mubr.msk.bf16.mxu0 %vm2783_vm0, %v2782_v0  ;;  %v2963_v3 = vld [vmem:[%s301_s25] sm:$0xff]  ;;  %v2965_v4 = vld [vmem:[%s301_s25 + $0x8] sm:$0xff]  ;;  %v2784_v8 = vmov 0   ;;  %v2785_v14 = vmov 1   ;;  %s2786_s21 = smov 124   ;;  %v2787_v19 = vmov 2  }
  0x3a   : > { %2366 = vmatprep.subr.bf16.mxu1 %v2782_v0  ;;  %2370 = vmatprep.mubr.msk.bf16.mxu1 %vm2783_vm0, %v2782_v0  ;;  %v2559_v5 = vld [vmem:[%s3383_s3] sm:$0xff]   ;;  %v355_v6 = vpack.c.bf16 %v2965_v4, %v2963_v3  ;;  %v2560_v7 = vld [vmem:[%s3383_s3 + $0x8] sm:$0xff]   ;;  %v2788_v20 = vmov 3   ;;  %p339_p6 = scmp.lt.s32.totalorder %s2858_s9, 1  ;;  %v523_v27 = vshrl.u32 %v522_v24, 7  ;;  %vm536_vm4 = vcmask 130048  }
  0x3b   : > { %2359 = vmatpush3.bf16.msra.mxu0 %v2557_v1  ;;  %2367 = vmatpush3.bf16.msra.mxu1 %v2559_v5  ;;  %s2311_s26 = sshll.u32 %s2858_s9, 8  ;;  %p3395_p12 = scmp.ne.s32.totalorder %s3392_s17, 0 }
  0x3c   : > { %2360 = vmatprep.subr.bf16.mxu0 %v2782_v0  ;;  %2368 = vmatprep.subr.bf16.mxu1 %v2782_v0  ;;  %s340_s19 = scalar_select %p339_p6, %s2858_s9, 1  ;;  %v3005_v30 = vsub.s32 0, %v523_v27  ;;  %v3007_v31 = vsub.s32 1, %v523_v27  ;;  %v3009_v32 = vsub.s32 2, %v523_v27  ;;  %v3021_v47 = vsub.s32 3, %v523_v27 }
  0x3d   : > { %2535 = vset.pattern.permute.xlu1 %v2784_v8  ;;  %2536 = vset.pattern.permute.xlu0 %v2785_v14  ;;  %s3332_s15 = scalar_lea.hbm %s3388_s8, %s2311_s26  ;;  %s2136_s9 = scalar_lea.sflag [#allocation4], %s2941_s22 }
  0x3e   : > { %s2310_s25 = sshll.u32 %s340_s19, 3  ;;  %s2789_s13 = smov [#allocation5]  }
  0x3f   : > { %2361 = vmatpush3.bf16.msra.mxu0 %v2558_v2  ;;  %2369 = vmatpush3.bf16.msra.mxu1 %v2560_v7  ;;  %s343_s10 = scalar_lea.vmem %s3381_s1, %s2310_s25  ;;  %s2715_s19 = sshll.u32 %s2789_s13, 4  ;;  %s2716_s19 = int_to_ptr.vmem [resolvable:$false] %s2715_s19 }
  0x40   : > { %2374 = vmatprep.subr.bf16.mxu0 %v2782_v0  ;;  %2380 = vmatprep.subr.bf16.mxu1 %v2782_v0  ;;  %v2313_v36 = vld [vmem:[%s343_s10] sm:$0xff]   ;;  %s338_s10 = scalar_lea.vmem [#allocation5], %s2241_s23 }
  0x41   : > { %v3017_v43 = vunpack.c.h.bf16 %v2313_v36  ;;  %v3019_v44 = vunpack.c.l.bf16 %v2313_v36  ;;  %s2149_s12 = sshll.u32 %s338_s10, 4  ;;  %s3334_s12 = int_to_ptr.vmem [resolvable:$true] %s2149_s12 }
  0x42   : > { %2363 = vmatmul.mubr.msk.bf16.vlgmr.msra.gmra.mrb[0].mxu0 %vm368_vm1, %v355_v6  ;;  %s2711_s23 = scalar_lea.vmem %s3334_s12, 256  ;;  %p2718_p10 = scmp.lt.s32.totalorder %s3334_s12, %s2716_s19 }
  0x43   : > { %2376 = vmatprep.mubr.msk.bf16.mxu0 %vm2783_vm0, %v2782_v0  ;;  %p2712_p11 = scmp.ne.s32.totalorder %s3334_s12, %s2711_s23 }
  0x45   : > { %p2713_p13 = pnand %p2712_p11, %p3395_p12 }
  0x47   : > { %p2714_p8 = pneg %p2713_p13 }
 0x115   : > { %v406_v9 = vpop.f32.mrb[0].mxu0 }
 0x116   : > { %v2364_v10 = vpop.f32.mrb[1].mxu0 }
 0x117   : > { %v409_v11 = vpop.f32.mrb[2].mxu0 }
 0x118   : > { %v2983_v12 = vpack.c.bf16 %v409_v11, %v406_v9  ;;  %v2365_v13 = vpop.f32.mrb[3].mxu0 }
 0x11a   : > { %2371 = vmatmul.mubr.msk.bf16.vlgmr.msra.gmra.mrb[0].mxu1 %vm368_vm1, %v2983_v12  ;;  %2375 = vmatpush3.bf16.msra.mxu0 %v2983_v12 }
 0x11b   : > { %2381 = vmatpush3.bf16.msra.mxu1 %v2983_v12  ;;  %2386 = vmatprep.subr.bf16.mxu0 %v2782_v0 }
 0x11c   : > { %2382 = vmatprep.mubr.msk.bf16.mxu1 %vm2783_vm0, %v2782_v0  ;;  %2392 = vmatprep.subr.bf16.mxu1 %v2782_v0 }
 0x1ed   : > { %v467_v15 = vpop.f32.mrb[0].mxu1 }
 0x1ee   : > { %515 = vperm.xlu1 %2535, %v467_v15   ;;  %476 = vrot.lane.b32.xlu0 %v467_v15, %s2786_s21  ;;  %v2372_v16 = vpop.f32.mrb[1].mxu1 }
 0x1ef   : > { %v470_v17 = vpop.f32.mrb[2].mxu1 }
 0x1f0   : > { %v2373_v18 = vpop.f32.mrb[3].mxu1 }
 0x1f2   : > { %2537 = vset.pattern.permute.xlu1 %v2787_v19  ;;  %478 = vrot.lane.b32.xlu0 %v470_v17, %s2786_s21 }
 0x1f3   : > { %712 = vperm.xlu1 %2537, %v467_v15  }
 0x1f6   : > { %614 = vperm.xlu0 %2536, %v467_v15  }
 0x1f7   : > { %2538 = vset.pattern.permute.xlu1 %v2784_v8 }
 0x1f8   : > { %519 = vperm.xlu1 %2538, %v470_v17  }
 0x1fa   : > { %2541 = vset.pattern.permute.xlu0 %v2787_v19 }
 0x1fb   : > { %716 = vperm.xlu0 %2541, %v470_v17  }
 0x1fc   : > { %2539 = vset.pattern.permute.xlu1 %v2785_v14 }
 0x1fd   : > { %618 = vperm.xlu1 %2539, %v470_v17  }
 0x201   : > { %2540 = vset.pattern.permute.xlu1 %v2788_v20 }
 0x202   : > { %810 = vperm.xlu1 %2540, %v467_v15  }
 0x206   : > { %814 = vperm.xlu1 %2540, %v470_v17  }
 0x20a   : > { %2542 = vset.pattern.permute.xlu1 %v2784_v8 }
 0x260   : > { %v477_v21 = vpop.permute.xlu0 %476 }
 0x261   : > { %482 = vxpose.xlu0.b32.start [1/2] (short) (narrow) %v477_v21, 8 }
 0x264   : > { %v479_v22 = vpop.permute.xlu0 %478 }
 0x265   : > { %483 = vxpose.xlu0.b32.end [2/2] (short) (narrow) %v479_v22, 8 }
 0x26d   : > { %v516_v23 = vpop.permute.xlu1 %515 }
 0x272   : > { %v713_v25 = vpop.permute.xlu1 %712 }
 0x275   : > { %v615_v26 = vpop.permute.xlu0 %614 }
 0x277   : > { %v520_v28 = vpop.permute.xlu1 %519 }
 0x27a   : > { %v717_v29 = vpop.permute.xlu0 %716 }
 0x27c   : > { %v619_v37 = vpop.permute.xlu1 %618 }
 0x281   : > { %v811_v63 = vpop.permute.xlu1 %810 }
 0x285   : > { %v815_v9 = vpop.permute.xlu1 %814 }
 0x28e   : > { %2543 = vset.pattern.permute.xlu0 %v2785_v14 }
 0x2e1   : > { %v498_v33 = vpop.trf.xlu0 }
 0x2e2   : > { %v525_v34 = vrot.slane %v498_v33, %v3005_v30  ;;  %v624_v35 = vrot.slane %v498_v33, %v3007_v31  ;;  %v722_v38 = vrot.slane %v498_v33, %v3009_v32  ;;  %v820_v60 = vrot.slane %v498_v33, %v3021_v47 }
 0x2e4   : > { %v526_v39 = vadd.f32 %v525_v34, %v516_v23  ;;  %v527_v40 = vadd.f32 %v525_v34, %v520_v28  ;;  %v625_v41 = vadd.f32 %v624_v35, %v615_v26  ;;  %v626_v42 = vadd.f32 %v624_v35, %v619_v37 }
 0x2e5   : > { %v723_v49 = vadd.f32 %v722_v38, %v713_v25  ;;  %v724_v59 = vadd.f32 %v722_v38, %v717_v29  ;;  %v821_v5 = vadd.f32 %v820_v60, %v811_v63  ;;  %v822_v13 = vadd.f32 %v820_v60, %v815_v9 }
 0x2e6   : > { %vm529_vm2 = vcmp.gt.f32.partialorder %v527_v40, 0.0  ;;  %v531_v45 = vmul.f32 0.2, %v527_v40  ;;  %vm528_vm3 = vcmp.gt.f32.partialorder %v526_v39, 0.0  ;;  %v530_v46 = vmul.f32 0.2, %v526_v39 }
 0x2e7   : > { %vm627_vm5 = vcmp.gt.f32.partialorder %v625_v41, 0.0  ;;  %v629_v48 = vmul.f32 0.2, %v625_v41  ;;  %v630_v52 = vmul.f32 0.2, %v626_v42  ;;  %vm628_vm6 = vcmp.gt.f32.partialorder %v626_v42, 0.0 }
 0x2e8   : > { %v533_v50 = vsel %vm529_vm2, %v527_v40, %v531_v45  ;;  %v532_v51 = vsel %vm528_vm3, %v526_v39, %v530_v46  ;;  %v727_v62 = vmul.f32 0.2, %v723_v49  ;;  %vm725_vm7 = vcmp.gt.f32.partialorder %v723_v49, 0.0 }
 0x2e9   : > { %v535_v53 = vadd.f32 %v3017_v43, %v533_v50  ;;  %v534_v54 = vadd.f32 %v3019_v44, %v532_v51  ;;  %v631_v55 = vsel %vm627_vm5, %v625_v41, %v629_v48  ;;  %v632_v61 = vsel %vm628_vm6, %v626_v42, %v630_v52 }
 0x2ea   : > { %v633_v58 = vadd.f32 %v3019_v44, %v631_v55  ;;  %v634_v2 = vadd.f32 %v3017_v43, %v632_v61  ;;  %v729_v6 = vsel %vm725_vm7, %v723_v49, %v727_v62  ;;  %v728_v7 = vmul.f32 0.2, %v724_v59 }
 0x2eb   : > { %v540_v56 = vsel %vm536_vm4, %v535_v53, -inf  ;;  %v537_v57 = vsel %vm536_vm4, %v534_v54, -inf  ;;  %vm726_vm8 = vcmp.gt.f32.partialorder %v724_v59, 0.0  ;;  %v731_v11 = vadd.f32 %v3019_v44, %v729_v6 }
 0x2ec   : > { %541 = vmax.xlane.f32.xlu0 %v540_v56  ;;  %538 = vmax.xlane.f32.xlu1 %v537_v57  ;;  %v635_v1 = vsel %vm536_vm4, %v633_v58, -inf  ;;  %v638_v10 = vsel %vm536_vm4, %v634_v2, -inf  ;;  %v730_v15 = vsel %vm726_vm8, %v724_v59, %v728_v7  ;;  %v825_v16 = vmul.f32 0.2, %v821_v5 }
 0x2ed   : > { %vm823_vm9 = vcmp.gt.f32.partialorder %v821_v5, 0.0  ;;  %v733_v17 = vsel %vm536_vm4, %v731_v11, -inf  ;;  %v732_v18 = vadd.f32 %v3017_v43, %v730_v15  ;;  %v826_v22 = vmul.f32 0.2, %v822_v13 }
 0x2ee   : > { %v827_v21 = vsel %vm823_vm9, %v821_v5, %v825_v16  ;;  %vm824_vm10 = vcmp.gt.f32.partialorder %v822_v13, 0.0 }
 0x2ef   : > { %v736_v23 = vsel %vm536_vm4, %v732_v18, -inf  ;;  %v829_v24 = vadd.f32 %v3019_v44, %v827_v21  ;;  %v828_v25 = vsel %vm824_vm10, %v822_v13, %v826_v22 }
 0x2f0   : > { %636 = vmax.xlane.f32.xlu1 %v635_v1  ;;  %v830_v27 = vadd.f32 %v3017_v43, %v828_v25 }
 0x2f1   : > { %v831_v26 = vsel %vm536_vm4, %v829_v24, -inf }
 0x2f2   : > { %v834_v28 = vsel %vm536_vm4, %v830_v27, -inf }
 0x2f4   : > { %639 = vmax.xlane.f32.xlu1 %v638_v10 }
 0x2f8   : > { %734 = vmax.xlane.f32.xlu1 %v733_v17 }
 0x2fc   : > { %737 = vmax.xlane.f32.xlu1 %v736_v23 }
 0x300   : > { %832 = vmax.xlane.f32.xlu1 %v831_v26 }
 0x304   : > { %835 = vmax.xlane.f32.xlu1 %v834_v28 }
 0x379   : > { %v542_v29 = vpop.xlane.xlu0 %541  ;;  %v539_v33 = vpop.xlane.xlu1 %538 }
 0x37a   : > { %v544_v34 = vsub.f32 %v535_v53, %v542_v29  ;;  %v543_v35 = vsub.f32 %v534_v54, %v539_v33 }
 0x37c   : > { %v545_v36 = vmul.f32 1.442695, %v543_v35  ;;  %v547_v37 = vmul.f32 1.442695, %v544_v34 }
 0x37d   : > { %v637_v38 = vpop.xlane.xlu1 %636 }
 0x37e   : > { %v641_v39 = vsub.f32 %v633_v58, %v637_v38  ;;  %2569 = vpow2.f32 %v545_v36 }
 0x37f   : > { %2571 = vpow2.f32 %v547_v37 }
 0x380   : > { %v643_v40 = vmul.f32 1.442695, %v641_v39 }
 0x381   : > { %v640_v41 = vpop.xlane.xlu1 %639 }
 0x382   : > { %v642_v42 = vsub.f32 %v634_v2, %v640_v41  ;;  %2573 = vpow2.f32 %v643_v40 }
 0x384   : > { %v645_v45 = vmul.f32 1.442695, %v642_v42 }
 0x385   : > { %v735_v46 = vpop.xlane.xlu1 %734 }
 0x386   : > { %v739_v48 = vsub.f32 %v731_v11, %v735_v46  ;;  %2575 = vpow2.f32 %v645_v45 }
 0x388   : > { %v2570_v49 = vpop.eup %2569  ;;  %v741_v50 = vmul.f32 1.442695, %v739_v48 }
 0x389   : > { %v738_v51 = vpop.xlane.xlu1 %737  ;;  %v549_v53 = vsel %vm536_vm4, %v2570_v49, 0.0  ;;  %v2572_v54 = vpop.eup %2571 }
 0x38a   : > { %v740_v52 = vsub.f32 %v732_v18, %v738_v51  ;;  %550 = vadd.xlane.f32.xlu1 %v549_v53  ;;  %2577 = vpow2.f32 %v741_v50  ;;  %v552_v58 = vsel %vm536_vm4, %v2572_v54, 0.0 }
 0x38c   : > { %v743_v55 = vmul.f32 1.442695, %v740_v52  ;;  %v2574_v59 = vpop.eup %2573 }
 0x38d   : > { %v833_v56 = vpop.xlane.xlu1 %832  ;;  %v647_v63 = vsel %vm536_vm4, %v2574_v59, 0.0 }
 0x38e   : > { %2579 = vpow2.f32 %v743_v55  ;;  %v837_v57 = vsub.f32 %v829_v24, %v833_v56  ;;  %553 = vadd.xlane.f32.xlu1 %v552_v58  ;;  %v3067_v56 = vld [vmem:[%s3387_s7] ss:$0 sm:$0xff] }
 0x390   : > { %v839_v60 = vmul.f32 1.442695, %v837_v57  ;;  %v2576_v1 = vpop.eup %2575  ;;  %v3072_v57 = vld [vmem:[%s3387_s7 + $0x1] ss:$0 sm:$0xff] }
 0x391   : > { %v836_v61 = vpop.xlane.xlu1 %835  ;;  %v650_v5 = vsel %vm536_vm4, %v2576_v1, 0.0 }
 0x392   : > { %2581 = vpow2.f32 %v839_v60  ;;  %v838_v62 = vsub.f32 %v830_v27, %v836_v61  ;;  %648 = vadd.xlane.f32.xlu1 %v647_v63  ;;  %v3079_v63 = vld [vmem:[%s3387_s7 + $0x2] ss:$0 sm:$0xff] }
 0x394   : > { %v841_v2 = vmul.f32 1.442695, %v838_v62  ;;  %v2578_v6 = vpop.eup %2577 }
 0x395   : > { %v745_v10 = vsel %vm536_vm4, %v2578_v6, 0.0 }
 0x396   : > { %2583 = vpow2.f32 %v841_v2  ;;  %651 = vadd.xlane.f32.xlu1 %v650_v5 }
 0x398   : > { %v2580_v7 = vpop.eup %2579 }
 0x399   : > { %v748_v9 = vsel %vm536_vm4, %v2580_v7, 0.0 }
 0x39a   : > { %749 = vadd.xlane.f32.xlu0 %v748_v9  ;;  %746 = vadd.xlane.f32.xlu1 %v745_v10 }
 0x39c   : > { %v2582_v11 = vpop.eup %2581 }
 0x39d   : > { %v843_v13 = vsel %vm536_vm4, %v2582_v11, 0.0 }
 0x39e   : > { %844 = vadd.xlane.f32.xlu1 %v843_v13 }
 0x3a0   : > { %v2584_v15 = vpop.eup %2583 }
 0x3a1   : > { %v846_v16 = vsel %vm536_vm4, %v2584_v15, 0.0 }
 0x3a2   : > { %847 = vadd.xlane.f32.xlu0 %v846_v16 }
 0x417   : > { %v551_v17 = vpop.xlane.xlu1 %550 }
 0x418   : > { %2585 = vrcp.f32 %v551_v17 }
 0x41b   : > { %v554_v18 = vpop.xlane.xlu1 %553 }
 0x41c   : > { %2587 = vrcp.f32 %v554_v18 }
 0x41f   : > { %v649_v21 = vpop.xlane.xlu1 %648 }
 0x420   : > { %2589 = vrcp.f32 %v649_v21  ;;  %v3088_v21 = vld [vmem:[%s3387_s7 + $0x3] ss:$0 sm:$0xff] }
 0x422   : > { %v2586_v23 = vpop.eup %2585 }
 0x423   : > { %v652_v22 = vpop.xlane.xlu1 %651  ;;  %v557_v26 = vmul.f32 %v2586_v23, %v2570_v49 }
 0x424   : > { %2591 = vrcp.f32 %v652_v22 }
 0x426   : > { %v2588_v24 = vpop.eup %2587 }
 0x427   : > { %v750_v25 = vpop.xlane.xlu0 %749  ;;  %v558_v27 = vmul.f32 %v2588_v24, %v2572_v54  ;;  %v747_v28 = vpop.xlane.xlu1 %746 }
 0x428   : > { %2593 = vrcp.f32 %v750_v25  ;;  %v2259_v25 = vld [vmem:[%s3384_s4] ss:$0 sm:$0xff] }
 0x429   : > { %2595 = vrcp.f32 %v747_v28  ;;  %v559_v29 = vpack.c.bf16 %v558_v27, %v557_v26 }
 0x42a   : > { %v2590_v34 = vpop.eup %2589 }
 0x42b   : > { %2377 = vmatmul.mubr.msk.bf16.vlgmr.msra.gmra.mrb[4].mxu0 %vm536_vm4, %v559_v29  ;;  %v845_v33 = vpop.xlane.xlu1 %844  ;;  %v655_v37 = vmul.f32 %v2590_v34, %v2574_v59 }
 0x42c   : > { %2387 = vmatpush3.bf16.msra.mxu0 %v2983_v12  ;;  %2388 = vmatprep.mubr.msk.bf16.mxu0 %vm2783_vm0, %v2782_v0  ;;  %2597 = vrcp.f32 %v845_v33 }
 0x42d   : > { %2398 = vmatprep.subr.bf16.mxu0 %v2782_v0 }
 0x42e   : > { %v2592_v35 = vpop.eup %2591 }
 0x42f   : > { %v848_v36 = vpop.xlane.xlu0 %847  ;;  %v656_v38 = vmul.f32 %v2592_v35, %v2576_v1 }
 0x430   : > { %2599 = vrcp.f32 %v848_v36 }
 0x431   : > { %v657_v40 = vpack.c.bf16 %v656_v38, %v655_v37 }
 0x432   : > { %v2594_v39 = vpop.eup %2593 }
 0x433   : > { %v2596_v41 = vpop.eup %2595  ;;  %v754_v42 = vmul.f32 %v2594_v39, %v2580_v7  ;;  %2383 = vmatmul.mubr.msk.bf16.vlgmr.msra.gmra.mrb[4].mxu1 %vm536_vm4, %v657_v40 }
 0x434   : > { %v753_v45 = vmul.f32 %v2596_v41, %v2578_v6  ;;  %2393 = vmatpush3.bf16.msra.mxu1 %v2983_v12  ;;  %2394 = vmatprep.mubr.msk.bf16.mxu1 %vm2783_vm0, %v2782_v0 }
 0x435   : > { %2406 = vmatprep.subr.bf16.mxu1 %v2782_v0 }
 0x436   : > { %v755_v46 = vpack.c.bf16 %v754_v42, %v753_v45  ;;  %v2598_v48 = vpop.eup %2597 }
 0x437   : > { %v851_v50 = vmul.f32 %v2598_v48, %v2582_v11 }
 0x438   : > { %2389 = vmatmul.mubr.msk.bf16.vlgmr.msra.gmra.mrb[8].mxu0 %vm536_vm4, %v755_v46 }
 0x439   : > { %2402 = vmatprep.mubr.msk.bf16.mxu0 %vm2783_vm0, %v2782_v0 }
 0x43a   : > { %v2600_v49 = vpop.eup %2599 }
 0x43b   : > { %v852_v51 = vmul.f32 %v2600_v49, %v2584_v15 }
 0x43d   : > { %v853_v52 = vpack.c.bf16 %v852_v51, %v851_v50 }
 0x43f   : > { %2395 = vmatmul.mubr.msk.bf16.vlgmr.msra.gmra.mrb[8].mxu1 %vm536_vm4, %v853_v52 }
 0x440   : > { %2410 = vmatprep.mubr.msk.bf16.mxu1 %vm2783_vm0, %v2782_v0 }
 0x4fe   : > { %v597_v12 = vpop.f32.mrb[4].mxu0 }
 0x4ff   : > { %v2378_v53 = vpop.f32.mrb[5].mxu0  ;;  %v609_v59 = vmul.f32 %v3067_v56, %v597_v12 }
 0x500   : > { %v600_v54 = vpop.f32.mrb[6].mxu0  ;;  %v2562_v53 = vld [vmem:[%s3382_s2 + $0x18] sm:$0xff]  }
 0x501   : > { %v2379_v55 = vpop.f32.mrb[7].mxu0  ;;  %v610_v1 = vmul.f32 %v3067_v56, %v600_v54  ;;  %v2563_v54 = vld [vmem:[%s3383_s3 + $0x10] sm:$0xff]  }
 0x502   : > { %2407 = vmatpush3.bf16.msra.mxu1 %v2563_v54 }
 0x503   : > { %2408 = vmatprep.subr.bf16.mxu1 %v2782_v0 }
 0x506   : > { %v695_v58 = vpop.f32.mrb[4].mxu1 }
 0x507   : > { %v707_v60 = vmul.f32 %v3072_v57, %v695_v58  ;;  %v2384_v61 = vpop.f32.mrb[5].mxu1 }
 0x508   : > { %v698_v62 = vpop.f32.mrb[6].mxu1 }
 0x509   : > { %v709_v2 = vadd.f32 %v707_v60, %v609_v59  ;;  %v708_v5 = vmul.f32 %v3072_v57, %v698_v62  ;;  %v2385_v6 = vpop.f32.mrb[7].mxu1 }
 0x50b   : > { %v793_v7 = vpop.f32.mrb[8].mxu0  ;;  %v710_v9 = vadd.f32 %v708_v5, %v610_v1 }
 0x50c   : > { %v805_v10 = vmul.f32 %v3079_v63, %v793_v7  ;;  %v2390_v11 = vpop.f32.mrb[9].mxu0 }
 0x50d   : > { %v796_v13 = vpop.f32.mrb[10].mxu0 }
 0x50e   : > { %v807_v15 = vadd.f32 %v805_v10, %v709_v2  ;;  %v806_v16 = vmul.f32 %v3079_v63, %v796_v13  ;;  %v2391_v17 = vpop.f32.mrb[11].mxu0  ;;  %v2260_v2 = vld [vmem:[%s3385_s5] ss:$0 sm:$0xff] }
 0x50f   : > { %v2261_v10 = vld [vmem:[%s3386_s6] ss:$0 sm:$0xff]  ;;  %v2564_v17 = vld [vmem:[%s3383_s3 + $0x18] sm:$0xff]  }
 0x510   : > { %v808_v18 = vadd.f32 %v806_v16, %v710_v9  ;;  %2409 = vmatpush3.bf16.msra.mxu1 %v2564_v17 }
 0x511   : > { %2420 = vmatprep.subr.bf16.mxu1 %v2782_v0 }
 0x512   : > { %v891_v22 = vpop.f32.mrb[8].mxu1 }
 0x513   : > { %v903_v23 = vmul.f32 %v3088_v21, %v891_v22  ;;  %v2396_v24 = vpop.f32.mrb[9].mxu1 }
 0x514   : > { %v894_v26 = vpop.f32.mrb[10].mxu1 }
 0x515   : > { %v905_v27 = vadd.f32 %v903_v23, %v807_v15  ;;  %v904_v28 = vmul.f32 %v3088_v21, %v894_v26  ;;  %v2397_v29 = vpop.f32.mrb[11].mxu1 }
 0x517   : > { %v912_v33 = vadd.f32 %v2259_v25, %v905_v27  ;;  %v906_v34 = vadd.f32 %v904_v28, %v808_v18 }
 0x519   : > { %v913_v35 = vadd.f32 %v2259_v25, %v906_v34  ;;  %v914_v36 = vmax.f32 %v912_v33, 0.0 }
 0x51b   : > { %v916_v37 = vadd.f32 %v914_v36, %v2963_v3  ;;  %v915_v38 = vmax.f32 %v913_v35, 0.0 }
 0x51d   : > { %v918_v39 = vsel %vm368_vm1, %v916_v37, 0.0  ;;  %v917_v40 = vadd.f32 %v915_v38, %v2965_v4  ;;  %v2561_v4 = vld [vmem:[%s3382_s2 + $0x10] sm:$0xff]  }
 0x51e   : > { %919 = vadd.xlane.f32.xlu1 %v918_v39  ;;  %2399 = vmatpush3.bf16.msra.mxu0 %v2561_v4 }
 0x51f   : > { %v921_v41 = vsel %vm368_vm1, %v917_v40, 0.0  ;;  %2400 = vmatprep.subr.bf16.mxu0 %v2782_v0 }
 0x520   : > { %922 = vadd.xlane.f32.xlu0 %v921_v41 }
 0x522   : > { %2401 = vmatpush3.bf16.msra.mxu0 %v2562_v53 }
 0x523   : > { %2414 = vmatprep.subr.bf16.mxu0 %v2782_v0 }
 0x5ab   : > { %v920_v42 = vpop.xlane.xlu1 %919 }
 0x5ac   : > { %v925_v45 = vmul.f32 0.03125, %v920_v42 }
 0x5ad   : > { %v923_v46 = vpop.xlane.xlu0 %922 }
 0x5ae   : > { %v927_v48 = vsub.f32 %v916_v37, %v925_v45  ;;  %v926_v49 = vmul.f32 0.03125, %v923_v46 }
 0x5b0   : > { %v928_v50 = vsub.f32 %v917_v40, %v926_v49  ;;  %v929_v51 = vmul.f32 %v927_v48, %v927_v48 }
 0x5b2   : > { %v931_v52 = vsel %vm368_vm1, %v929_v51, 0.0  ;;  %v930_v12 = vmul.f32 %v928_v50, %v928_v50 }
 0x5b3   : > { %932 = vadd.xlane.f32.xlu1 %v931_v52 }
 0x5b4   : > { %v934_v3 = vsel %vm368_vm1, %v930_v12, 0.0 }
 0x5b5   : > { %935 = vadd.xlane.f32.xlu0 %v934_v3 }
 0x640   : > { %v933_v55 = vpop.xlane.xlu1 %932 }
 0x641   : > { %v937_v58 = vmul.f32 0.03125, %v933_v55 }
 0x642   : > { %v936_v59 = vpop.xlane.xlu0 %935 }
 0x643   : > { %v939_v60 = vadd.f32 1e-05, %v937_v58  ;;  %v938_v61 = vmul.f32 0.03125, %v936_v59 }
 0x645   : > { %2601 = vrsqrt.f32 %v939_v60  ;;  %v940_v62 = vadd.f32 1e-05, %v938_v61 }
 0x647   : > { %2603 = vrsqrt.f32 %v940_v62 }
 0x64f   : > { %v2602_v1 = vpop.eup %2601 }
 0x650   : > { %v943_v5 = vmul.f32 %v2602_v1, %v927_v48 }
 0x651   : > { %v2604_v6 = vpop.eup %2603 }
 0x652   : > { %v950_v7 = vmul.f32 %v2260_v2, %v943_v5  ;;  %v944_v9 = vmul.f32 %v2604_v6, %v928_v50 }
 0x654   : > { %v951_v11 = vmul.f32 %v2260_v2, %v944_v9  ;;  %v3119_v13 = vadd.f32 %v2261_v10, %v950_v7 }
 0x656   : > { %v3121_v15 = vadd.f32 %v2261_v10, %v951_v11 }
 0x658   : > { %v964_v16 = vpack.c.bf16 %v3121_v15, %v3119_v13 }
 0x65a   : > { %2403 = vmatmul.mubr.msk.bf16.vlgmr.msra.gmra.mrb[12].mxu0 %vm368_vm1, %v964_v16 }
 0x65b   : > { %2416 = vmatprep.mubr.msk.bf16.mxu0 %vm2783_vm0, %v2782_v0 }
 0x72d   : > { %v1014_v18 = vpop.f32.mrb[12].mxu0 }
 0x72e   : > { %v2404_v22 = vpop.f32.mrb[13].mxu0 }
 0x72f   : > { %v1017_v23 = vpop.f32.mrb[14].mxu0 }
 0x730   : > { %v3132_v24 = vpack.c.bf16 %v1017_v23, %v1014_v18  ;;  %v2405_v25 = vpop.f32.mrb[15].mxu0 }
 0x732   : > { %2411 = vmatmul.mubr.msk.bf16.vlgmr.msra.gmra.mrb[12].mxu1 %vm368_vm1, %v3132_v24  ;;  %2415 = vmatpush3.bf16.msra.mxu0 %v3132_v24 }
 0x733   : > { %2421 = vmatpush3.bf16.msra.mxu1 %v3132_v24  ;;  %2426 = vmatprep.subr.bf16.mxu0 %v2782_v0 }
 0x734   : > { %2422 = vmatprep.mubr.msk.bf16.mxu1 %vm2783_vm0, %v2782_v0  ;;  %2432 = vmatprep.subr.bf16.mxu1 %v2782_v0 }
 0x805   : > { %v1076_v26 = vpop.f32.mrb[12].mxu1 }
 0x806   : > { %1085 = vrot.lane.b32.xlu1 %v1076_v26, %s2786_s21  ;;  %v2412_v27 = vpop.f32.mrb[13].mxu1 }
 0x807   : > { %v1079_v28 = vpop.f32.mrb[14].mxu1 }
 0x808   : > { %1087 = vrot.lane.b32.xlu0 %v1079_v28, %s2786_s21  ;;  %v2413_v29 = vpop.f32.mrb[15].mxu1 }
 0x80a   : > { %1124 = vperm.xlu1 %2542, %v1076_v26  }
 0x80c   : > { %1217 = vperm.xlu0 %2543, %v1076_v26  }
 0x80e   : > { %2544 = vset.pattern.permute.xlu1 %v2787_v19 }
 0x80f   : > { %1310 = vperm.xlu1 %2544, %v1076_v26  }
 0x810   : > { %2548 = vset.pattern.permute.xlu0 %v2787_v19 }
 0x811   : > { %1314 = vperm.xlu0 %2548, %v1079_v28  }
 0x813   : > { %2545 = vset.pattern.permute.xlu1 %v2784_v8 }
 0x814   : > { %1128 = vperm.xlu1 %2545, %v1079_v28  }
 0x818   : > { %2546 = vset.pattern.permute.xlu1 %v2785_v14 }
 0x819   : > { %1221 = vperm.xlu1 %2546, %v1079_v28  }
 0x81d   : > { %2547 = vset.pattern.permute.xlu1 %v2788_v20 }
 0x81e   : > { %1403 = vperm.xlu1 %2547, %v1076_v26  }
 0x822   : > { %1407 = vperm.xlu1 %2547, %v1079_v28  }
 0x826   : > { %2549 = vset.pattern.permute.xlu1 %v2784_v8 }
 0x878   : > { %v1086_v33 = vpop.permute.xlu1 %1085 }
 0x879   : > { %1091 = vxpose.xlu0.b32.start [1/2] (short) (narrow) %v1086_v33, 8 }
 0x87a   : > { %v1088_v34 = vpop.permute.xlu0 %1087 }
 0x87d   : > { %1092 = vxpose.xlu0.b32.end [2/2] (short) (narrow) %v1088_v34, 8 }
 0x889   : > { %v1125_v35 = vpop.permute.xlu1 %1124 }
 0x88b   : > { %v1218_v36 = vpop.permute.xlu0 %1217 }
 0x88e   : > { %v1311_v37 = vpop.permute.xlu1 %1310 }
 0x890   : > { %v1315_v38 = vpop.permute.xlu0 %1314 }
 0x893   : > { %v1129_v39 = vpop.permute.xlu1 %1128 }
 0x898   : > { %v1222_v45 = vpop.permute.xlu1 %1221 }
 0x89d   : > { %v1404_v9 = vpop.permute.xlu1 %1403 }
 0x8a1   : > { %v1408_v22 = vpop.permute.xlu1 %1407 }
 0x8a6   : > { %2550 = vset.pattern.permute.xlu0 %v2785_v14 }
 0x8f9   : > { %v1107_v40 = vpop.trf.xlu0 }
 0x8fa   : > { %v1134_v41 = vrot.slane %v1107_v40, %v3005_v30  ;;  %v1227_v42 = vrot.slane %v1107_v40, %v3007_v31  ;;  %v1320_v46 = vrot.slane %v1107_v40, %v3009_v32  ;;  %v1413_v5 = vrot.slane %v1107_v40, %v3021_v47 }
 0x8fc   : > { %v1135_v48 = vadd.f32 %v1134_v41, %v1125_v35  ;;  %v1136_v49 = vadd.f32 %v1134_v41, %v1129_v39  ;;  %v1228_v50 = vadd.f32 %v1227_v42, %v1218_v36  ;;  %v1229_v51 = vadd.f32 %v1227_v42, %v1222_v45 }
 0x8fd   : > { %v1321_v4 = vadd.f32 %v1320_v46, %v1311_v37  ;;  %v1322_v2 = vadd.f32 %v1320_v46, %v1315_v38  ;;  %v1414_v16 = vadd.f32 %v1413_v5, %v1404_v9  ;;  %v1415_v26 = vadd.f32 %v1413_v5, %v1408_v22 }
 0x8fe   : > { %vm1138_vm11 = vcmp.gt.f32.partialorder %v1136_v49, 0.0  ;;  %v1140_v52 = vmul.f32 0.2, %v1136_v49  ;;  %vm1137_vm12 = vcmp.gt.f32.partialorder %v1135_v48, 0.0  ;;  %v1139_v12 = vmul.f32 0.2, %v1135_v48 }
 0x8ff   : > { %vm1230_vm13 = vcmp.gt.f32.partialorder %v1228_v50, 0.0  ;;  %v1232_v3 = vmul.f32 0.2, %v1228_v50  ;;  %v1233_v55 = vmul.f32 0.2, %v1229_v51  ;;  %vm1231_vm14 = vcmp.gt.f32.partialorder %v1229_v51, 0.0 }
 0x900   : > { %v1142_v53 = vsel %vm1138_vm11, %v1136_v49, %v1140_v52  ;;  %v1141_v54 = vsel %vm1137_vm12, %v1135_v48, %v1139_v12  ;;  %v1325_v7 = vmul.f32 0.2, %v1321_v4  ;;  %vm1323_vm15 = vcmp.gt.f32.partialorder %v1321_v4, 0.0 }
 0x901   : > { %v1144_v58 = vadd.f32 %v3017_v43, %v1142_v53  ;;  %v1143_v59 = vadd.f32 %v3019_v44, %v1141_v54  ;;  %v1234_v60 = vsel %vm1230_vm13, %v1228_v50, %v1232_v3  ;;  %v1235_v6 = vsel %vm1231_vm14, %v1229_v51, %v1233_v55 }
 0x902   : > { %v1236_v1 = vadd.f32 %v3019_v44, %v1234_v60  ;;  %v1237_v11 = vadd.f32 %v3017_v43, %v1235_v6  ;;  %v1327_v17 = vsel %vm1323_vm15, %v1321_v4, %v1325_v7  ;;  %v1326_v18 = vmul.f32 0.2, %v1322_v2 }
 0x903   : > { %v1148_v61 = vsel %vm536_vm4, %v1144_v58, -inf  ;;  %v1145_v62 = vsel %vm536_vm4, %v1143_v59, -inf  ;;  %vm1324_vm2 = vcmp.gt.f32.partialorder %v1322_v2, 0.0  ;;  %v1329_v25 = vadd.f32 %v3019_v44, %v1327_v17 }
 0x904   : > { %1149 = vmax.xlane.f32.xlu0 %v1148_v61  ;;  %1146 = vmax.xlane.f32.xlu1 %v1145_v62  ;;  %v1238_v10 = vsel %vm536_vm4, %v1236_v1, -inf  ;;  %v1241_v23 = vsel %vm536_vm4, %v1237_v11, -inf  ;;  %v1328_v27 = vsel %vm1324_vm2, %v1322_v2, %v1326_v18  ;;  %v1418_v28 = vmul.f32 0.2, %v1414_v16 }
 0x905   : > { %vm1416_vm3 = vcmp.gt.f32.partialorder %v1414_v16, 0.0  ;;  %v1331_v29 = vsel %vm536_vm4, %v1329_v25, -inf  ;;  %v1330_v33 = vadd.f32 %v3017_v43, %v1328_v27  ;;  %v1419_v35 = vmul.f32 0.2, %v1415_v26 }
 0x906   : > { %v1420_v34 = vsel %vm1416_vm3, %v1414_v16, %v1418_v28  ;;  %vm1417_vm5 = vcmp.gt.f32.partialorder %v1415_v26, 0.0 }
 0x907   : > { %v1334_v36 = vsel %vm536_vm4, %v1330_v33, -inf  ;;  %v1422_v37 = vadd.f32 %v3019_v44, %v1420_v34  ;;  %v1421_v38 = vsel %vm1417_vm5, %v1415_v26, %v1419_v35 }
 0x908   : > { %1239 = vmax.xlane.f32.xlu1 %v1238_v10  ;;  %v1423_v40 = vadd.f32 %v3017_v43, %v1421_v38 }
 0x909   : > { %v1424_v39 = vsel %vm536_vm4, %v1422_v37, -inf }
 0x90a   : > { %v1427_v41 = vsel %vm536_vm4, %v1423_v40, -inf }
 0x90c   : > { %1242 = vmax.xlane.f32.xlu1 %v1241_v23 }
 0x910   : > { %1332 = vmax.xlane.f32.xlu1 %v1331_v29 }
 0x914   : > { %1335 = vmax.xlane.f32.xlu1 %v1334_v36 }
 0x918   : > { %1425 = vmax.xlane.f32.xlu1 %v1424_v39 }
 0x91c   : > { %1428 = vmax.xlane.f32.xlu1 %v1427_v41 }
 0x991   : > { %v1150_v42 = vpop.xlane.xlu0 %1149  ;;  %v1147_v45 = vpop.xlane.xlu1 %1146 }
 0x992   : > { %v1152_v46 = vsub.f32 %v1144_v58, %v1150_v42  ;;  %v1151_v48 = vsub.f32 %v1143_v59, %v1147_v45 }
 0x994   : > { %v1153_v49 = vmul.f32 1.442695, %v1151_v48  ;;  %v1155_v50 = vmul.f32 1.442695, %v1152_v46 }
 0x995   : > { %v1240_v51 = vpop.xlane.xlu1 %1239 }
 0x996   : > { %v1244_v52 = vsub.f32 %v1236_v1, %v1240_v51  ;;  %2605 = vpow2.f32 %v1153_v49 }
 0x997   : > { %2607 = vpow2.f32 %v1155_v50 }
 0x998   : > { %v1246_v12 = vmul.f32 1.442695, %v1244_v52 }
 0x999   : > { %v1243_v3 = vpop.xlane.xlu1 %1242 }
 0x99a   : > { %v1245_v4 = vsub.f32 %v1237_v11, %v1243_v3  ;;  %2609 = vpow2.f32 %v1246_v12 }
 0x99c   : > { %v1248_v53 = vmul.f32 1.442695, %v1245_v4 }
 0x99d   : > { %v1333_v54 = vpop.xlane.xlu1 %1332 }
 0x99e   : > { %v1337_v55 = vsub.f32 %v1329_v25, %v1333_v54  ;;  %2611 = vpow2.f32 %v1248_v53 }
 0x9a0   : > { %v2606_v60 = vpop.eup %2605  ;;  %v1339_v61 = vmul.f32 1.442695, %v1337_v55 }
 0x9a1   : > { %v1336_v62 = vpop.xlane.xlu1 %1335  ;;  %v1157_v58 = vsel %vm536_vm4, %v2606_v60, 0.0  ;;  %v2608_v59 = vpop.eup %2607 }
 0x9a2   : > { %v1338_v2 = vsub.f32 %v1330_v33, %v1336_v62  ;;  %1158 = vadd.xlane.f32.xlu1 %v1157_v58  ;;  %2613 = vpow2.f32 %v1339_v61  ;;  %v1160_v7 = vsel %vm536_vm4, %v2608_v59, 0.0 }
 0x9a4   : > { %v1341_v5 = vmul.f32 1.442695, %v1338_v2  ;;  %v2610_v9 = vpop.eup %2609 }
 0x9a5   : > { %v1426_v1 = vpop.xlane.xlu1 %1425  ;;  %v1250_v17 = vsel %vm536_vm4, %v2610_v9, 0.0 }
 0x9a6   : > { %2615 = vpow2.f32 %v1341_v5  ;;  %v1430_v6 = vsub.f32 %v1422_v37, %v1426_v1  ;;  %1161 = vadd.xlane.f32.xlu1 %v1160_v7 }
 0x9a8   : > { %v1432_v10 = vmul.f32 1.442695, %v1430_v6  ;;  %v2612_v18 = vpop.eup %2611 }
 0x9a9   : > { %v1429_v11 = vpop.xlane.xlu1 %1428  ;;  %v1253_v23 = vsel %vm536_vm4, %v2612_v18, 0.0 }
 0x9aa   : > { %2617 = vpow2.f32 %v1432_v10  ;;  %v1431_v16 = vsub.f32 %v1423_v40, %v1429_v11  ;;  %1251 = vadd.xlane.f32.xlu1 %v1250_v17 }
 0x9ac   : > { %v1434_v22 = vmul.f32 1.442695, %v1431_v16  ;;  %v2614_v25 = vpop.eup %2613 }
 0x9ad   : > { %v1343_v28 = vsel %vm536_vm4, %v2614_v25, 0.0 }
 0x9ae   : > { %2619 = vpow2.f32 %v1434_v22  ;;  %1254 = vadd.xlane.f32.xlu1 %v1253_v23 }
 0x9b0   : > { %v2616_v26 = vpop.eup %2615 }
 0x9b1   : > { %v1346_v27 = vsel %vm536_vm4, %v2616_v26, 0.0 }
 0x9b2   : > { %1347 = vadd.xlane.f32.xlu0 %v1346_v27  ;;  %1344 = vadd.xlane.f32.xlu1 %v1343_v28 }
 0x9b4   : > { %v2618_v29 = vpop.eup %2617 }
 0x9b5   : > { %v1436_v33 = vsel %vm536_vm4, %v2618_v29, 0.0 }
 0x9b6   : > { %1437 = vadd.xlane.f32.xlu1 %v1436_v33 }
 0x9b8   : > { %v2620_v34 = vpop.eup %2619 }
 0x9b9   : > { %v1439_v35 = vsel %vm536_vm4, %v2620_v34, 0.0 }
 0x9ba   : > { %1440 = vadd.xlane.f32.xlu0 %v1439_v35 }
 0xa2f   : > { %v1159_v36 = vpop.xlane.xlu1 %1158 }
 0xa30   : > { %2621 = vrcp.f32 %v1159_v36 }
 0xa33   : > { %v1162_v37 = vpop.xlane.xlu1 %1161 }
 0xa34   : > { %2623 = vrcp.f32 %v1162_v37 }
 0xa37   : > { %v1252_v38 = vpop.xlane.xlu1 %1251 }
 0xa38   : > { %2625 = vrcp.f32 %v1252_v38 }
 0xa3a   : > { %v2622_v40 = vpop.eup %2621 }
 0xa3b   : > { %v1255_v39 = vpop.xlane.xlu1 %1254  ;;  %v1165_v45 = vmul.f32 %v2622_v40, %v2606_v60 }
 0xa3c   : > { %2627 = vrcp.f32 %v1255_v39 }
 0xa3e   : > { %v2624_v41 = vpop.eup %2623 }
 0xa3f   : > { %v1348_v42 = vpop.xlane.xlu0 %1347  ;;  %v1166_v46 = vmul.f32 %v2624_v41, %v2608_v59  ;;  %v1345_v48 = vpop.xlane.xlu1 %1344 }
 0xa40   : > { %2629 = vrcp.f32 %v1348_v42 }
 0xa41   : > { %2631 = vrcp.f32 %v1345_v48  ;;  %v1167_v49 = vpack.c.bf16 %v1166_v46, %v1165_v45 }
 0xa42   : > { %v2626_v51 = vpop.eup %2625 }
 0xa43   : > { %2417 = vmatmul.mubr.msk.bf16.vlgmr.msra.gmra.mrb[16].mxu0 %vm536_vm4, %v1167_v49  ;;  %v1438_v50 = vpop.xlane.xlu1 %1437  ;;  %v1258_v3 = vmul.f32 %v2626_v51, %v2610_v9 }
 0xa44   : > { %2427 = vmatpush3.bf16.msra.mxu0 %v3132_v24  ;;  %2428 = vmatprep.mubr.msk.bf16.mxu0 %vm2783_vm0, %v2782_v0  ;;  %2633 = vrcp.f32 %v1438_v50 }
 0xa45   : > { %2438 = vmatprep.subr.bf16.mxu0 %v2782_v0 }
 0xa46   : > { %v2628_v52 = vpop.eup %2627 }
 0xa47   : > { %v1441_v12 = vpop.xlane.xlu0 %1440  ;;  %v1259_v4 = vmul.f32 %v2628_v52, %v2612_v18 }
 0xa48   : > { %2635 = vrcp.f32 %v1441_v12 }
 0xa49   : > { %v1260_v54 = vpack.c.bf16 %v1259_v4, %v1258_v3 }
 0xa4a   : > { %v2630_v53 = vpop.eup %2629 }
 0xa4b   : > { %v2632_v55 = vpop.eup %2631  ;;  %v1352_v60 = vmul.f32 %v2630_v53, %v2616_v26  ;;  %2423 = vmatmul.mubr.msk.bf16.vlgmr.msra.gmra.mrb[16].mxu1 %vm536_vm4, %v1260_v54 }
 0xa4c   : > { %v1351_v61 = vmul.f32 %v2632_v55, %v2614_v25  ;;  %2433 = vmatpush3.bf16.msra.mxu1 %v3132_v24  ;;  %2434 = vmatprep.mubr.msk.bf16.mxu1 %vm2783_vm0, %v2782_v0 }
 0xa4d   : > { %2446 = vmatprep.subr.bf16.mxu1 %v2782_v0 }
 0xa4e   : > { %v1353_v62 = vpack.c.bf16 %v1352_v60, %v1351_v61  ;;  %v2634_v2 = vpop.eup %2633 }
 0xa4f   : > { %v1444_v59 = vmul.f32 %v2634_v2, %v2618_v29 }
 0xa50   : > { %2429 = vmatmul.mubr.msk.bf16.vlgmr.msra.gmra.mrb[20].mxu0 %vm536_vm4, %v1353_v62 }
 0xa51   : > { %2442 = vmatprep.mubr.msk.bf16.mxu0 %vm2783_vm0, %v2782_v0 }
 0xa52   : > { %v2636_v58 = vpop.eup %2635 }
 0xa53   : > { %v1445_v5 = vmul.f32 %v2636_v58, %v2620_v34 }
 0xa55   : > { %v1446_v1 = vpack.c.bf16 %v1445_v5, %v1444_v59  ;;  %v2566_v59 = vld [vmem:[%s3382_s2 + $0x28] sm:$0xff]   ;;  %v2567_v5 = vld [vmem:[%s3383_s3 + $0x20] sm:$0xff]  }
 0xa57   : > { %2435 = vmatmul.mubr.msk.bf16.vlgmr.msra.gmra.mrb[20].mxu1 %vm536_vm4, %v1446_v1 }
 0xa58   : > { %2450 = vmatprep.mubr.msk.bf16.mxu1 %vm2783_vm0, %v2782_v0  ;;  %2447 = vmatpush3.bf16.msra.mxu1 %v2567_v5 }
 0xa59   : > { %2448 = vmatprep.subr.bf16.mxu1 %v2782_v0 }
 0xb16   : > { %v1205_v24 = vpop.f32.mrb[16].mxu0 }
 0xb17   : > { %v2418_v6 = vpop.f32.mrb[17].mxu0  ;;  %v1212_v11 = vmul.f32 %v3067_v56, %v1205_v24 }
 0xb18   : > { %v1208_v7 = vpop.f32.mrb[18].mxu0 }
 0xb19   : > { %v2419_v9 = vpop.f32.mrb[19].mxu0  ;;  %v1213_v22 = vmul.f32 %v3067_v56, %v1208_v7  ;;  %v2280_v56 = vld [vmem:[%s3384_s4 + $0x1] ss:$0 sm:$0xff] }
 0xb1e   : > { %v1298_v10 = vpop.f32.mrb[16].mxu1 }
 0xb1f   : > { %v1305_v16 = vmul.f32 %v3072_v57, %v1298_v10  ;;  %v2424_v17 = vpop.f32.mrb[17].mxu1 }
 0xb20   : > { %v1301_v18 = vpop.f32.mrb[18].mxu1 }
 0xb21   : > { %v1307_v23 = vadd.f32 %v1305_v16, %v1212_v11  ;;  %v1306_v25 = vmul.f32 %v3072_v57, %v1301_v18  ;;  %v2425_v26 = vpop.f32.mrb[19].mxu1  ;;  %v2281_v16 = vld [vmem:[%s3385_s5 + $0x1] ss:$0 sm:$0xff] }
 0xb23   : > { %v1391_v27 = vpop.f32.mrb[20].mxu0  ;;  %v1308_v28 = vadd.f32 %v1306_v25, %v1213_v22  ;;  %v2282_v25 = vld [vmem:[%s3386_s6 + $0x1] ss:$0 sm:$0xff] }
 0xb24   : > { %v1398_v29 = vmul.f32 %v3079_v63, %v1391_v27  ;;  %v2430_v33 = vpop.f32.mrb[21].mxu0 }
 0xb25   : > { %v1394_v34 = vpop.f32.mrb[22].mxu0  ;;  %v2568_v33 = vld [vmem:[%s3383_s3 + $0x28] sm:$0xff]  }
 0xb26   : > { %v1400_v35 = vadd.f32 %v1398_v29, %v1307_v23  ;;  %v1399_v36 = vmul.f32 %v3079_v63, %v1394_v34  ;;  %v2431_v37 = vpop.f32.mrb[23].mxu0  ;;  %2449 = vmatpush3.bf16.msra.mxu1 %v2568_v33 }
 0xb27   : > { %2460 = vmatprep.subr.bf16.mxu1 %v2782_v0 }
 0xb28   : > { %v1401_v38 = vadd.f32 %v1399_v36, %v1308_v28 }
 0xb2a   : > { %v1484_v39 = vpop.f32.mrb[20].mxu1 }
 0xb2b   : > { %v1491_v40 = vmul.f32 %v3088_v21, %v1484_v39  ;;  %v2436_v41 = vpop.f32.mrb[21].mxu1 }
 0xb2c   : > { %v1487_v57 = vpop.f32.mrb[22].mxu1 }
 0xb2d   : > { %v1493_v42 = vadd.f32 %v1491_v40, %v1400_v35  ;;  %v1492_v45 = vmul.f32 %v3088_v21, %v1487_v57  ;;  %v2437_v46 = vpop.f32.mrb[23].mxu1 }
 0xb2f   : > { %v1500_v48 = vadd.f32 %v2280_v56, %v1493_v42  ;;  %v1494_v49 = vadd.f32 %v1492_v45, %v1401_v38 }
 0xb31   : > { %v1501_v50 = vadd.f32 %v2280_v56, %v1494_v49  ;;  %v1502_v51 = vmax.f32 %v1500_v48, 0.0 }
 0xb33   : > { %v1504_v63 = vadd.f32 %v1502_v51, %v3119_v13  ;;  %v1503_v52 = vmax.f32 %v1501_v50, 0.0 }
 0xb35   : > { %v1506_v12 = vsel %vm368_vm1, %v1504_v63, 0.0  ;;  %v1505_v3 = vadd.f32 %v1503_v52, %v3121_v15  ;;  %v2565_v15 = vld [vmem:[%s3382_s2 + $0x20] sm:$0xff]  }
 0xb36   : > { %1507 = vadd.xlane.f32.xlu1 %v1506_v12  ;;  %2439 = vmatpush3.bf16.msra.mxu0 %v2565_v15 }
 0xb37   : > { %v1509_v4 = vsel %vm368_vm1, %v1505_v3, 0.0  ;;  %2440 = vmatprep.subr.bf16.mxu0 %v2782_v0 }
 0xb38   : > { %1510 = vadd.xlane.f32.xlu0 %v1509_v4 }
 0xb3a   : > { %2441 = vmatpush3.bf16.msra.mxu0 %v2566_v59 }
 0xb3b   : > { %2454 = vmatprep.subr.bf16.mxu0 %v2782_v0 }
 0xbc3   : > { %v1508_v53 = vpop.xlane.xlu1 %1507 }
 0xbc4   : > { %v1512_v54 = vmul.f32 0.03125, %v1508_v53 }
 0xbc5   : > { %v1511_v55 = vpop.xlane.xlu0 %1510 }
 0xbc6   : > { %v1514_v21 = vsub.f32 %v1504_v63, %v1512_v54  ;;  %v1513_v60 = vmul.f32 0.03125, %v1511_v55 }
 0xbc8   : > { %v1515_v61 = vsub.f32 %v1505_v3, %v1513_v60  ;;  %v1516_v62 = vmul.f32 %v1514_v21, %v1514_v21 }
 0xbca   : > { %v1518_v2 = vsel %vm368_vm1, %v1516_v62, 0.0  ;;  %v1517_v58 = vmul.f32 %v1515_v61, %v1515_v61 }
 0xbcb   : > { %1519 = vadd.xlane.f32.xlu1 %v1518_v2 }
 0xbcc   : > { %v1521_v13 = vsel %vm368_vm1, %v1517_v58, 0.0 }
 0xbcd   : > { %1522 = vadd.xlane.f32.xlu0 %v1521_v13 }
 0xc58   : > { %v1520_v1 = vpop.xlane.xlu1 %1519 }
 0xc59   : > { %v1524_v24 = vmul.f32 0.03125, %v1520_v1 }
 0xc5a   : > { %v1523_v6 = vpop.xlane.xlu0 %1522 }
 0xc5b   : > { %v1526_v7 = vadd.f32 1e-05, %v1524_v24  ;;  %v1525_v9 = vmul.f32 0.03125, %v1523_v6 }
 0xc5d   : > { %2637 = vrsqrt.f32 %v1526_v7  ;;  %v1527_v10 = vadd.f32 1e-05, %v1525_v9 }
 0xc5f   : > { %2639 = vrsqrt.f32 %v1527_v10 }
 0xc67   : > { %v2638_v11 = vpop.eup %2637 }
 0xc68   : > { %v1530_v17 = vmul.f32 %v2638_v11, %v1514_v21 }
 0xc69   : > { %v2640_v18 = vpop.eup %2639 }
 0xc6a   : > { %v1537_v22 = vmul.f32 %v2281_v16, %v1530_v17  ;;  %v1531_v23 = vmul.f32 %v2640_v18, %v1515_v61 }
 0xc6c   : > { %v1538_v26 = vmul.f32 %v2281_v16, %v1531_v23  ;;  %v3230_v27 = vadd.f32 %v2282_v25, %v1537_v22 }
 0xc6e   : > { %v3232_v28 = vadd.f32 %v2282_v25, %v1538_v26 }
 0xc70   : > { %v1551_v29 = vpack.c.bf16 %v3232_v28, %v3230_v27 }
 0xc72   : > { %2443 = vmatmul.mubr.msk.bf16.vlgmr.msra.gmra.mrb[24].mxu0 %vm368_vm1, %v1551_v29 }
 0xc73   : > { %2456 = vmatprep.mubr.msk.bf16.mxu0 %vm2783_vm0, %v2782_v0 }
 0xd45   : > { %v1601_v34 = vpop.f32.mrb[24].mxu0 }
 0xd46   : > { %v2444_v35 = vpop.f32.mrb[25].mxu0 }
 0xd47   : > { %v1604_v36 = vpop.f32.mrb[26].mxu0 }
 0xd48   : > { %v3243_v37 = vpack.c.bf16 %v1604_v36, %v1601_v34  ;;  %v2445_v38 = vpop.f32.mrb[27].mxu0 }
 0xd4a   : > { %2451 = vmatmul.mubr.msk.bf16.vlgmr.msra.gmra.mrb[24].mxu1 %vm368_vm1, %v3243_v37  ;;  %2455 = vmatpush3.bf16.msra.mxu0 %v3243_v37 }
 0xd4b   : > { %2461 = vmatpush3.bf16.msra.mxu1 %v3243_v37  ;;  %2466 = vmatprep.subr.bf16.mxu0 %v2782_v0 }
 0xd4c   : > { %2462 = vmatprep.mubr.msk.bf16.mxu1 %vm2783_vm0, %v2782_v0  ;;  %2472 = vmatprep.subr.bf16.mxu1 %v2782_v0 }
 0xe1d   : > { %v1663_v39 = vpop.f32.mrb[24].mxu1 }
 0xe1e   : > { %1672 = vrot.lane.b32.xlu1 %v1663_v39, %s2786_s21  ;;  %v2452_v40 = vpop.f32.mrb[25].mxu1 }
 0xe1f   : > { %v1666_v41 = vpop.f32.mrb[26].mxu1 }
 0xe20   : > { %1674 = vrot.lane.b32.xlu0 %v1666_v41, %s2786_s21  ;;  %v2453_v56 = vpop.f32.mrb[27].mxu1  ;;  %s2717_s21 = scalar_lea.vmem %s2716_s19, 512 }
 0xe21   : > { %p2719_p0 = scmp.lt.s32.totalorder %s2717_s21, %s2711_s23 }
 0xe22   : > { %1711 = vperm.xlu1 %2549, %v1663_v39  }
 0xe23   : > { %p2720_p2 = por %p2719_p0, %p2718_p10 }
 0xe24   : > { %1804 = vperm.xlu0 %2550, %v1663_v39  }
 0xe25   : > { %p2721_p4 = pnand %p2720_p2, %p2714_p8 }
 0xe26   : > { %2551 = vset.pattern.permute.xlu1 %v2787_v19 }
 0xe27   : > { %1897 = vperm.xlu1 %2551, %v1663_v39  }
 0xe28   : > { %2555 = vset.pattern.permute.xlu0 %v2787_v19 }
 0xe29   : > { %1901 = vperm.xlu0 %2555, %v1666_v41  }
 0xe2b   : > { %2552 = vset.pattern.permute.xlu1 %v2784_v8 }
 0xe2c   : > { %1715 = vperm.xlu1 %2552, %v1666_v41  }
 0xe30   : > { %2553 = vset.pattern.permute.xlu1 %v2785_v14 }
 0xe31   : > { %1808 = vperm.xlu1 %2553, %v1666_v41  }
 0xe35   : > { %2554 = vset.pattern.permute.xlu1 %v2788_v20 }
 0xe36   : > { %1990 = vperm.xlu1 %2554, %v1663_v39  }
 0xe3a   : > { %1994 = vperm.xlu1 %2554, %v1666_v41  }
 0xe90   : > { %v1673_v57 = vpop.permute.xlu1 %1672 }
 0xe91   : > { %1678 = vxpose.xlu0.b32.start [1/2] (short) (narrow) %v1673_v57, 8 }
 0xe92   : > { %v1675_v42 = vpop.permute.xlu0 %1674 }
 0xe95   : > { %1679 = vxpose.xlu0.b32.end [2/2] (short) (narrow) %v1675_v42, 8 }
 0xea1   : > { %v1712_v45 = vpop.permute.xlu1 %1711 }
 0xea3   : > { %v1805_v46 = vpop.permute.xlu0 %1804 }
 0xea6   : > { %v1898_v19 = vpop.permute.xlu1 %1897 }
 0xea8   : > { %v1902_v48 = vpop.permute.xlu0 %1901 }
 0xeab   : > { %v1716_v49 = vpop.permute.xlu1 %1715 }
 0xeb0   : > { %v1809_v51 = vpop.permute.xlu1 %1808 }
 0xeb5   : > { %v1991_v1 = vpop.permute.xlu1 %1990 }
 0xeb9   : > { %v1995_v11 = vpop.permute.xlu1 %1994 }
 0xebe   : > { %2556 = vset.pattern.permute.xlu0 %v2788_v20 }
 0xf11   : > { %v1694_v8 = vpop.trf.xlu0 }
 0xf12   : > { %v1721_v50 = vrot.slane %v1694_v8, %v3005_v30  ;;  %v1814_v14 = vrot.slane %v1694_v8, %v3007_v31  ;;  %v1907_v63 = vrot.slane %v1694_v8, %v3009_v32  ;;  %v2000_v15 = vrot.slane %v1694_v8, %v3021_v47 }
 0xf14   : > { %v1722_v52 = vadd.f32 %v1721_v50, %v1712_v45  ;;  %v1723_v12 = vadd.f32 %v1721_v50, %v1716_v49  ;;  %v1815_v3 = vadd.f32 %v1814_v14, %v1805_v46  ;;  %v1816_v4 = vadd.f32 %v1814_v14, %v1809_v51 }
 0xf15   : > { %v1908_v55 = vadd.f32 %v1907_v63, %v1898_v19  ;;  %v1909_v13 = vadd.f32 %v1907_v63, %v1902_v48  ;;  %v2001_v7 = vadd.f32 %v2000_v15, %v1991_v1  ;;  %v2002_v17 = vadd.f32 %v2000_v15, %v1995_v11 }
 0xf16   : > { %vm1725_vm6 = vcmp.gt.f32.partialorder %v1723_v12, 0.0  ;;  %v1727_v53 = vmul.f32 0.2, %v1723_v12  ;;  %vm1724_vm7 = vcmp.gt.f32.partialorder %v1722_v52, 0.0  ;;  %v1726_v20 = vmul.f32 0.2, %v1722_v52 }
 0xf17   : > { %vm1817_vm8 = vcmp.gt.f32.partialorder %v1815_v3, 0.0  ;;  %v1819_v54 = vmul.f32 0.2, %v1815_v3  ;;  %v1820_v61 = vmul.f32 0.2, %v1816_v4  ;;  %vm1818_vm9 = vcmp.gt.f32.partialorder %v1816_v4, 0.0 }
 0xf18   : > { %v1729_v21 = vsel %vm1725_vm6, %v1723_v12, %v1727_v53  ;;  %v1728_v60 = vsel %vm1724_vm7, %v1722_v52, %v1726_v20  ;;  %v1912_v5 = vmul.f32 0.2, %v1908_v55  ;;  %vm1910_vm10 = vcmp.gt.f32.partialorder %v1908_v55, 0.0 }
 0xf19   : > { %v1731_v30 = vadd.f32 %v3017_v43, %v1729_v21  ;;  %v1730_v31 = vadd.f32 %v3019_v44, %v1728_v60  ;;  %v1821_v62 = vsel %vm1817_vm8, %v1815_v3, %v1819_v54  ;;  %v1822_v59 = vsel %vm1818_vm9, %v1816_v4, %v1820_v61 }
 0xf1a   : > { %v1823_v58 = vadd.f32 %v3019_v44, %v1821_v62  ;;  %v1824_v6 = vadd.f32 %v3017_v43, %v1822_v59  ;;  %v1914_v9 = vsel %vm1910_vm10, %v1908_v55, %v1912_v5  ;;  %v1913_v10 = vmul.f32 0.2, %v1909_v13 }
 0xf1b   : > { %v1735_v32 = vsel %vm536_vm4, %v1731_v30, -inf  ;;  %v1732_v2 = vsel %vm536_vm4, %v1730_v31, -inf  ;;  %vm1911_vm11 = vcmp.gt.f32.partialorder %v1909_v13, 0.0  ;;  %v1916_v47 = vadd.f32 %v3019_v44, %v1914_v9 }
 0xf1c   : > { %1736 = vmax.xlane.f32.xlu0 %v1735_v32  ;;  %1733 = vmax.xlane.f32.xlu1 %v1732_v2  ;;  %v1825_v24 = vsel %vm536_vm4, %v1823_v58, -inf  ;;  %v1828_v16 = vsel %vm536_vm4, %v1824_v6, -inf  ;;  %v1915_v18 = vsel %vm1911_vm11, %v1909_v13, %v1913_v10  ;;  %v2005_v22 = vmul.f32 0.2, %v2001_v7 }
 0xf1d   : > { %vm2003_vm12 = vcmp.gt.f32.partialorder %v2001_v7, 0.0  ;;  %v1918_v23 = vsel %vm536_vm4, %v1916_v47, -inf  ;;  %v1917_v25 = vadd.f32 %v3017_v43, %v1915_v18  ;;  %v2006_v29 = vmul.f32 0.2, %v2002_v17 }
 0xf1e   : > { %v2007_v26 = vsel %vm2003_vm12, %v2001_v7, %v2005_v22  ;;  %vm2004_vm13 = vcmp.gt.f32.partialorder %v2002_v17, 0.0 }
 0xf1f   : > { %v1921_v33 = vsel %vm536_vm4, %v1917_v25, -inf  ;;  %v2009_v34 = vadd.f32 %v3019_v44, %v2007_v26  ;;  %v2008_v35 = vsel %vm2004_vm13, %v2002_v17, %v2006_v29 }
 0xf20   : > { %1826 = vmax.xlane.f32.xlu1 %v1825_v24  ;;  %v2010_v38 = vadd.f32 %v3017_v43, %v2008_v35 }
 0xf21   : > { %v2011_v36 = vsel %vm536_vm4, %v2009_v34, -inf }
 0xf22   : > { %v2014_v39 = vsel %vm536_vm4, %v2010_v38, -inf }
 0xf24   : > { %1829 = vmax.xlane.f32.xlu1 %v1828_v16 }
 0xf28   : > { %1919 = vmax.xlane.f32.xlu1 %v1918_v23 }
 0xf2c   : > { %1922 = vmax.xlane.f32.xlu1 %v1921_v33 }
 0xf30   : > { %2012 = vmax.xlane.f32.xlu1 %v2011_v36 }
 0xf34   : > { %2015 = vmax.xlane.f32.xlu1 %v2014_v39 }
 0xfa9   : > { %v1737_v40 = vpop.xlane.xlu0 %1736  ;;  %v1734_v41 = vpop.xlane.xlu1 %1733 }
 0xfaa   : > { %v1739_v56 = vsub.f32 %v1731_v30, %v1737_v40  ;;  %v1738_v57 = vsub.f32 %v1730_v31, %v1734_v41 }
 0xfac   : > { %v1740_v42 = vmul.f32 1.442695, %v1738_v57  ;;  %v1742_v45 = vmul.f32 1.442695, %v1739_v56 }
 0xfad   : > { %v1827_v46 = vpop.xlane.xlu1 %1826 }
 0xfae   : > { %v1831_v19 = vsub.f32 %v1823_v58, %v1827_v46  ;;  %2641 = vpow2.f32 %v1740_v42 }
 0xfaf   : > { %2643 = vpow2.f32 %v1742_v45 }
 0xfb0   : > { %v1833_v44 = vmul.f32 1.442695, %v1831_v19 }
 0xfb1   : > { %v1830_v48 = vpop.xlane.xlu1 %1829 }
 0xfb2   : > { %v1832_v49 = vsub.f32 %v1824_v6, %v1830_v48  ;;  %2645 = vpow2.f32 %v1833_v44 }
 0xfb4   : > { %v1835_v8 = vmul.f32 1.442695, %v1832_v49 }
 0xfb5   : > { %v1920_v43 = vpop.xlane.xlu1 %1919 }
 0xfb6   : > { %v1924_v50 = vsub.f32 %v1916_v47, %v1920_v43  ;;  %2647 = vpow2.f32 %v1835_v8 }
 0xfb8   : > { %v2642_v14 = vpop.eup %2641  ;;  %v1926_v51 = vmul.f32 1.442695, %v1924_v50  ;;  %v2678_v50 = vld [vmem:[%s3387_s7 + $0x1] ss:$0 sm:$0xff] }
 0xfb9   : > { %v1923_v63 = vpop.xlane.xlu1 %1922  ;;  %v1744_v12 = vsel %vm536_vm4, %v2642_v14, 0.0  ;;  %v2644_v3 = vpop.eup %2643 }
 0xfba   : > { %v1925_v52 = vsub.f32 %v1917_v25, %v1923_v63  ;;  %1745 = vadd.xlane.f32.xlu1 %v1744_v12  ;;  %2649 = vpow2.f32 %v1926_v51  ;;  %v1747_v54 = vsel %vm536_vm4, %v2644_v3, 0.0 }
 0xfbc   : > { %v1928_v4 = vmul.f32 1.442695, %v1925_v52  ;;  %v2646_v55 = vpop.eup %2645 }
 0xfbd   : > { %v2013_v53 = vpop.xlane.xlu1 %2012  ;;  %v1837_v30 = vsel %vm536_vm4, %v2646_v55, 0.0 }
 0xfbe   : > { %2651 = vpow2.f32 %v1928_v4  ;;  %v2017_v20 = vsub.f32 %v2009_v34, %v2013_v53  ;;  %1748 = vadd.xlane.f32.xlu1 %v1747_v54  ;;  %v2679_v54 = vld [vmem:[%s3387_s7 + $0x2] ss:$0 sm:$0xff] }
 0xfc0   : > { %v2019_v21 = vmul.f32 1.442695, %v2017_v20  ;;  %v2648_v31 = vpop.eup %2647 }
 0xfc1   : > { %v2016_v60 = vpop.xlane.xlu1 %2015  ;;  %v1840_v32 = vsel %vm536_vm4, %v2648_v31, 0.0 }
 0xfc2   : > { %2653 = vpow2.f32 %v2019_v21  ;;  %v2018_v61 = vsub.f32 %v2010_v38, %v2016_v60  ;;  %1838 = vadd.xlane.f32.xlu1 %v1837_v30 }
 0xfc4   : > { %v2021_v62 = vmul.f32 1.442695, %v2018_v61  ;;  %v2650_v2 = vpop.eup %2649 }
 0xfc5   : > { %v1930_v15 = vsel %vm536_vm4, %v2650_v2, 0.0 }
 0xfc6   : > { %2655 = vpow2.f32 %v2021_v62  ;;  %1841 = vadd.xlane.f32.xlu1 %v1840_v32 }
 0xfc8   : > { %v2652_v58 = vpop.eup %2651 }
 0xfc9   : > { %v1933_v13 = vsel %vm536_vm4, %v2652_v58, 0.0 }
 0xfca   : > { %1934 = vadd.xlane.f32.xlu0 %v1933_v13  ;;  %1931 = vadd.xlane.f32.xlu1 %v1930_v15  ;;  %v2301_v15 = vld [vmem:[%s3384_s4 + $0x2] ss:$0 sm:$0xff] }
 0xfcc   : > { %v2654_v59 = vpop.eup %2653 }
 0xfcd   : > { %v2023_v5 = vsel %vm536_vm4, %v2654_v59, 0.0 }
 0xfce   : > { %2024 = vadd.xlane.f32.xlu1 %v2023_v5 }
 0xfd0   : > { %v2656_v1 = vpop.eup %2655 }
 0xfd1   : > { %v2026_v24 = vsel %vm536_vm4, %v2656_v1, 0.0 }
 0xfd2   : > { %2027 = vadd.xlane.f32.xlu0 %v2026_v24 }
0x1047   : > { %v1746_v6 = vpop.xlane.xlu1 %1745 }
0x1048   : > { %2657 = vrcp.f32 %v1746_v6 }
0x104b   : > { %v1749_v7 = vpop.xlane.xlu1 %1748 }
0x104c   : > { %2659 = vrcp.f32 %v1749_v7 }
0x104f   : > { %v1839_v9 = vpop.xlane.xlu1 %1838 }
0x1050   : > { %2661 = vrcp.f32 %v1839_v9 }
0x1052   : > { %v2658_v11 = vpop.eup %2657 }
0x1053   : > { %v1842_v10 = vpop.xlane.xlu1 %1841  ;;  %v1752_v17 = vmul.f32 %v2658_v11, %v2642_v14 }
0x1054   : > { %2663 = vrcp.f32 %v1842_v10 }
0x1056   : > { %v2660_v16 = vpop.eup %2659 }
0x1057   : > { %v1935_v47 = vpop.xlane.xlu0 %1934  ;;  %v1753_v18 = vmul.f32 %v2660_v16, %v2644_v3  ;;  %v1932_v22 = vpop.xlane.xlu1 %1931 }
0x1058   : > { %2665 = vrcp.f32 %v1935_v47 }
0x1059   : > { %2667 = vrcp.f32 %v1932_v22  ;;  %v1754_v23 = vpack.c.bf16 %v1753_v18, %v1752_v17 }
0x105a   : > { %v2662_v26 = vpop.eup %2661 }
0x105b   : > { %2457 = vmatmul.mubr.msk.bf16.vlgmr.msra.gmra.mrb[28].mxu0 %vm536_vm4, %v1754_v23  ;;  %v2025_v25 = vpop.xlane.xlu1 %2024  ;;  %v1845_v34 = vmul.f32 %v2662_v26, %v2646_v55 }
0x105c   : > { %2467 = vmatpush3.bf16.msra.mxu0 %v3243_v37  ;;  %2468 = vmatprep.mubr.msk.bf16.mxu0 %vm2783_vm0, %v2782_v0  ;;  %2669 = vrcp.f32 %v2025_v25 }
0x105e   : > { %v2664_v29 = vpop.eup %2663 }
0x105f   : > { %v2028_v33 = vpop.xlane.xlu0 %2027  ;;  %v1846_v35 = vmul.f32 %v2664_v29, %v2648_v31 }
0x1060   : > { %2671 = vrcp.f32 %v2028_v33 }
0x1061   : > { %v1847_v38 = vpack.c.bf16 %v1846_v35, %v1845_v34 }
0x1062   : > { %v2666_v36 = vpop.eup %2665 }
0x1063   : > { %v2668_v39 = vpop.eup %2667  ;;  %v1939_v40 = vmul.f32 %v2666_v36, %v2652_v58  ;;  %2463 = vmatmul.mubr.msk.bf16.vlgmr.msra.gmra.mrb[28].mxu1 %vm536_vm4, %v1847_v38 }
0x1064   : > { %v1938_v41 = vmul.f32 %v2668_v39, %v2650_v2  ;;  %2473 = vmatpush3.bf16.msra.mxu1 %v3243_v37  ;;  %2474 = vmatprep.mubr.msk.bf16.mxu1 %vm2783_vm0, %v2782_v0  ;;  %v2677_v37 = vld [vmem:[%s3387_s7] ss:$0 sm:$0xff]  ;;  %v2680_v2 = vld [vmem:[%s3387_s7 + $0x3] ss:$0 sm:$0xff] }
0x1066   : > { %v1940_v56 = vpack.c.bf16 %v1939_v40, %v1938_v41  ;;  %v2670_v57 = vpop.eup %2669 }
0x1067   : > { %v2031_v45 = vmul.f32 %v2670_v57, %v2654_v59 }
0x1068   : > { %2469 = vmatmul.mubr.msk.bf16.vlgmr.msra.gmra.mrb[32].mxu0 %vm536_vm4, %v1940_v56 }
0x106a   : > { %v2672_v42 = vpop.eup %2671 }
0x106b   : > { %v2032_v46 = vmul.f32 %v2672_v42, %v2656_v1  ;;  %v2302_v42 = vld [vmem:[%s3385_s5 + $0x2] ss:$0 sm:$0xff] }
0x106d   : > { %v2033_v19 = vpack.c.bf16 %v2032_v46, %v2031_v45 }
0x106f   : > { %2475 = vmatmul.mubr.msk.bf16.vlgmr.msra.gmra.mrb[32].mxu1 %vm536_vm4, %v2033_v19  ;;  %v2303_v19 = vld [vmem:[%s3386_s6 + $0x2] ss:$0 sm:$0xff] }
0x112e   : > { %v1792_v44 = vpop.f32.mrb[28].mxu0 }
0x112f   : > { %v2458_v48 = vpop.f32.mrb[29].mxu0  ;;  %v1799_v0 = vmul.f32 %v2677_v37, %v1792_v44 }
0x1130   : > { %v1795_v49 = vpop.f32.mrb[30].mxu0 }
0x1131   : > { %v2459_v8 = vpop.f32.mrb[31].mxu0  ;;  %v1800_v52 = vmul.f32 %v2677_v37, %v1795_v49 }
0x1136   : > { %v1885_v43 = vpop.f32.mrb[28].mxu1 }
0x1137   : > { %v1892_v14 = vmul.f32 %v2678_v50, %v1885_v43  ;;  %v2464_v51 = vpop.f32.mrb[29].mxu1 }
0x1138   : > { %v1888_v63 = vpop.f32.mrb[30].mxu1 }
0x1139   : > { %v1894_v12 = vadd.f32 %v1892_v14, %v1799_v0  ;;  %v1893_v3 = vmul.f32 %v2678_v50, %v1888_v63  ;;  %v2465_v4 = vpop.f32.mrb[31].mxu1 }
0x113b   : > { %v1978_v53 = vpop.f32.mrb[32].mxu0  ;;  %v1895_v20 = vadd.f32 %v1893_v3, %v1800_v52 }
0x113c   : > { %v1985_v55 = vmul.f32 %v2679_v54, %v1978_v53  ;;  %v2470_v21 = vpop.f32.mrb[33].mxu0 }
0x113d   : > { %v1981_v60 = vpop.f32.mrb[34].mxu0 }
0x113e   : > { %v1987_v61 = vadd.f32 %v1985_v55, %v1894_v12  ;;  %v1986_v30 = vmul.f32 %v2679_v54, %v1981_v60  ;;  %v2471_v31 = vpop.f32.mrb[35].mxu0 }
0x1140   : > { %v1988_v62 = vadd.f32 %v1986_v30, %v1895_v20 }
0x1142   : > { %v2071_v32 = vpop.f32.mrb[32].mxu1 }
0x1143   : > { %v2078_v58 = vmul.f32 %v2680_v2, %v2071_v32  ;;  %v2476_v13 = vpop.f32.mrb[33].mxu1 }
0x1144   : > { %v2074_v59 = vpop.f32.mrb[34].mxu1 }
0x1145   : > { %v2080_v5 = vadd.f32 %v2078_v58, %v1987_v61  ;;  %v2079_v1 = vmul.f32 %v2680_v2, %v2074_v59  ;;  %v2477_v24 = vpop.f32.mrb[35].mxu1 }
0x1147   : > { %v2087_v6 = vadd.f32 %v2301_v15, %v2080_v5  ;;  %v2081_v7 = vadd.f32 %v2079_v1, %v1988_v62 }
0x1149   : > { %v2089_v9 = vmax.f32 %v2087_v6, 0.0  ;;  %v2088_v10 = vadd.f32 %v2301_v15, %v2081_v7 }
0x114b   : > { %v2091_v11 = vadd.f32 %v2089_v9, %v3230_v27  ;;  %v2090_v16 = vmax.f32 %v2088_v10, 0.0 }
0x114d   : > { %v2093_v47 = vsel %vm368_vm1, %v2091_v11, 0.0  ;;  %v2092_v17 = vadd.f32 %v2090_v16, %v3232_v28 }
0x114e   : > { %2094 = vadd.xlane.f32.xlu1 %v2093_v47 }
0x114f   : > { %v2096_v18 = vsel %vm368_vm1, %v2092_v17, 0.0 }
0x1150   : > { %2097 = vadd.xlane.f32.xlu0 %v2096_v18 }
0x11db   : > { %v2095_v22 = vpop.xlane.xlu1 %2094 }
0x11dc   : > { %v2099_v23 = vmul.f32 0.03125, %v2095_v22 }
0x11dd   : > { %v2098_v25 = vpop.xlane.xlu0 %2097 }
0x11de   : > { %v2101_v26 = vsub.f32 %v2091_v11, %v2099_v23  ;;  %v2100_v29 = vmul.f32 0.03125, %v2098_v25 }
0x11e0   : > { %v2102_v33 = vsub.f32 %v2092_v17, %v2100_v29  ;;  %v2103_v34 = vmul.f32 %v2101_v26, %v2101_v26 }
0x11e2   : > { %v2105_v35 = vsel %vm368_vm1, %v2103_v34, 0.0  ;;  %v2104_v36 = vmul.f32 %v2102_v33, %v2102_v33 }
0x11e3   : > { %2106 = vadd.xlane.f32.xlu1 %v2105_v35 }
0x11e4   : > { %v2108_v27 = vsel %vm368_vm1, %v2104_v36, 0.0 }
0x11e5   : > { %2109 = vadd.xlane.f32.xlu0 %v2108_v27 }
0x1270   : > { %v2107_v28 = vpop.xlane.xlu1 %2106 }
0x1271   : > { %v2111_v38 = vmul.f32 0.03125, %v2107_v28 }
0x1272   : > { %v2110_v39 = vpop.xlane.xlu0 %2109 }
0x1273   : > { %v2113_v40 = vadd.f32 1e-05, %v2111_v38  ;;  %v2112_v41 = vmul.f32 0.03125, %v2110_v39 }
0x1275   : > { %2673 = vrsqrt.f32 %v2113_v40  ;;  %v2114_v56 = vadd.f32 1e-05, %v2112_v41 }
0x1277   : > { %2675 = vrsqrt.f32 %v2114_v56 }
0x127f   : > { %v2674_v57 = vpop.eup %2673 }
0x1280   : > { %v2117_v45 = vmul.f32 %v2674_v57, %v2101_v26 }
0x1281   : > { %v2676_v46 = vpop.eup %2675 }
0x1282   : > { %v2124_v44 = vmul.f32 %v2302_v42, %v2117_v45  ;;  %v2118_v48 = vmul.f32 %v2676_v46, %v2102_v33 }
0x1284   : > { %v2131_v49 = vadd.f32 %v2303_v19, %v2124_v44  ;;  %v2125_v8 = vmul.f32 %v2302_v42, %v2118_v48 }
0x1286   : > { %v2132_v43 = vadd.f32 %v2303_v19, %v2125_v8  ;;  %2133 = vst.msk [vmem:[%s338_s10] sm:$0xff] %vm368_vm1, %v2131_v49 }
0x1288   : > { %2134 = vst.msk [vmem:[%s338_s10 + $0x8] sm:$0xff] %vm368_vm1, %v2132_v43 }
0x1289   : > { %2724 = shalt.err (!%p2721_p4)
}
0x128a   : > { %s2725_s25 = scalar_lea.hbm %s3332_s15, 256  ;;  %s2729_s10 = scalar_lea.hbm %s3388_s8, 512 }
0x128b   : > { %p2726_p5 = scmp.ne.s32.totalorder %s3332_s15, %s2725_s25  ;;  %p2730_p1 = scmp.lt.u32.totalorder %s3332_s15, %s3388_s8 }
0x128c   : > { %p2731_p3 = scmp.lt.u32.totalorder %s2729_s10, %s2725_s25  ;;  %p2733_p11 = scmp.lt.u32.totalorder %s2725_s25, %s3332_s15 }
0x128d   : > { %p2727_p7 = pnand %p2726_p5, %p3395_p12 }
0x128e   : > { %p2732_p6 = por %p2731_p3, %p2730_p1 }
0x128f   : > { %p2728_p9 = pneg %p2727_p7 }
0x1290   : > { %p2734_p13 = por %p2733_p11, %p2732_p6 }
0x1292   : > { %p2735_p8 = pnand %p2734_p13, %p2728_p9 }
0x1294   : > { %2738 = shalt.err (!%p2735_p8)
}
0x1295   : > { %s2790_s23 = smov 128   ;;  %s2791_s13 = smov 8  }
0x1296   : > { %2480 = dma.vmem_to_hbm [thread:$0]  (%p3395_p12), %s3334_s12, 256, %s3332_s15, %s2136_s9, %s2790_s23, %s2790_s23, %s2791_s13  }
0x1297 PF: > { %s2164_s19 = sand.u32 1, %s2765_s27   ;;  %p3396_p10 = scmp.ne.s32.totalorder %s3393_s18, 0 }
0x1298   : > { %p3397_p0 = scmp.ge.s32.totalorder %s2777_s30, 2  ;;  %s2165_s21 = scalar_lea.sflag [#allocation4], %s2164_s19 }
0x129a   : > { %p2487_p2 = pnand %p3397_p0, %p3396_p10 }
0x129c   : > { %2760 = dma.done.wait (!%p2487_p2), %s2165_s21, 256  }
0x129d   : > { %2762 = vsyncadd (!%p2487_p2), %s2165_s21, 4294967040  ;;  %p21_p4 = scmp.ge.s32.totalorder %s2862_s11, 4   ;;  %s3398_s27 = smov %s2769_s28 }
0x129e   : > { %s3399_s28 = smov %s2773_s29  ;;  %s3400_s29 = smov %s2874_s14 }
0x129f   : > { %s3401_s30 = smov %s2862_s11  ;;  %23 = sbr.rel (!%p21_p4) target bundleno = 5 (0x5), region = 104 }
0x12a6   :  { %2170 = vsyncpa [#allocation3], 1 }
0x12a7   :  { %2172 = vsyncpa [#allocation3 + $0x1], 1 }
0x12a8   :  { %2173 = vsyncpa [#allocation4], 1 }
0x12a9   :  { %2175 = vsyncpa [#allocation4 + $0x1], 1 }

</bundles_post_ra>
